<compile_context>
chip_gen: v6e
topology: v6e:2x2x1
jax: 0.10.0
libtpu: 0.0.40
codegen_flags: <defaults>
</compile_context>

<pallas_src>
import functools

import jax
import jax.numpy as jnp
import numpy as np
from jax import lax
from jax.experimental import pallas as pl
from jax.experimental.pallas import tpu as pltpu

HIDDEN = 100
OUT = 2
H_PAD = 128      # padded lane width for hidden (100) and output (2) layers
LANE = 128
THRESH = 1.0


def _lif(cur, m_prev, beta):
    """snnTorch Leaky: subtract-reset, threshold=1.0, f32 state math."""
    m_new = beta * m_prev + cur - jnp.where(m_prev > THRESH, THRESH, 0.0)
    spk = (m_new > THRESH).astype(jnp.float32)
    return spk, m_new


def _lif_scan(cur_s, mem_s, beta, t_chunk, b_block, emit):
    """Serial-in-time LIF over a chunk slab stored in VMEM scratch.

    Reads row-blocks of `cur_s`, carries the (b_block, H_PAD) membrane in
    registers, writes the final state back to `mem_s`.  `emit(start, spk, m)`
    stores this timestep's results (spike slab rows / packed outputs).
    """
    def body(i, m_prev):
        start = pl.multiple_of(i * b_block, b_block)
        cur = cur_s[pl.ds(start, b_block), :]
        spk, m_new = _lif(cur, m_prev, beta)
        emit(start, spk, m_new)
        return m_new

    mem_s[...] = lax.fori_loop(0, t_chunk, body, mem_s[...],
                               unroll=min(8, t_chunk))


def _snn_kernel(x_ref, w1_ref, b1_ref, w2_ref, b2_ref, w3_ref, b3_ref,
                out_ref,
                mem1_s, mem2_s, mem3_s, cur_s, spk_s,
                *, beta, t_chunk, b_block):
    c = pl.program_id(1)                       # time-chunk index (serial axis)

    @pl.when(c == 0)
    def _init():                               # fresh membrane state per sequence
        mem1_s[...] = jnp.zeros_like(mem1_s)
        mem2_s[...] = jnp.zeros_like(mem2_s)
        mem3_s[...] = jnp.zeros_like(mem3_s)

    # ---- fc1: one chunk-wide matmul (M = t_chunk*b_block rows) ------------
    cur_s[...] = jnp.dot(x_ref[0], w1_ref[...],
                         preferred_element_type=jnp.float32) + b1_ref[...]

    # ---- layer-1 LIF scan -> spk slab (bf16; spikes are exactly 0/1) ------
    def emit_spk(start, spk, m_new):
        spk_s[pl.ds(start, b_block), :] = spk.astype(spk_s.dtype)

    _lif_scan(cur_s, mem1_s, beta, t_chunk, b_block, emit_spk)

    # ---- fc2: one chunk-wide matmul ----------------------------------------
    cur_s[...] = jnp.dot(spk_s[...], w2_ref[...],
                         preferred_element_type=jnp.float32) + b2_ref[...]

    # ---- layer-2 LIF scan -> spk slab (reused; spk1 already consumed) ------
    _lif_scan(cur_s, mem2_s, beta, t_chunk, b_block, emit_spk)

    # ---- fc3: one chunk-wide matmul ----------------------------------------
    cur_s[...] = jnp.dot(spk_s[...], w3_ref[...],
                         preferred_element_type=jnp.float32) + b3_ref[...]

    # ---- layer-3 LIF scan -> merged packed output (spk0,spk1,mem0,mem1) ----
    def emit_out(start, spk, m_new):
        out_ref[0, 0, pl.ds(start, b_block), pl.ds(0, OUT)] = spk[:, :OUT]
        out_ref[0, 0, pl.ds(start, b_block), pl.ds(OUT, OUT)] = m_new[:, :OUT]

    _lif_scan(cur_s, mem3_s, beta, t_chunk, b_block, emit_out)


def _auto_chunk(T, b_block, itemsize, budget_bytes):
    """Largest t_chunk whose VMEM footprint fits the (portable) budget."""
    # Per slab-row cost (lane-padded to 128): f32 cur slab + spk slab +
    # double-buffered x block + double-buffered packed output block.
    row_bytes = LANE * 4 + LANE * itemsize + 2 * LANE * itemsize + 2 * LANE * 4
    rows = max(b_block, budget_bytes // row_bytes)
    return max(1, min(T, rows // b_block))


def snn_forward(x, params, beta, *, matmul_dtype=jnp.bfloat16, t_chunk=None,
                n_batch_blocks=None, vmem_budget_bytes=20 * 2**20):
    """x: (T, B, D_in) float32.  Returns (spikes, mem_rec), each (T, B, 2)."""
    T, B, D_in = x.shape
    w1, b1, w2, b2, w3, b3 = params

    # --- batch: pad to a sublane multiple; split into blocks for v7x's 2 TCs
    B_pad = ((B + 7) // 8) * 8
    if n_batch_blocks is None:
        n_batch_blocks = 2 if (B_pad % 16 == 0) else 1
    n_b = n_batch_blocks
    assert B_pad % (8 * n_b) == 0, "batch blocks must be multiples of 8 rows"
    b_block = B_pad // n_b

    # --- time: VMEM-budget-aware chunk size; pad T up to a chunk multiple ---
    itemsize = jnp.dtype(matmul_dtype).itemsize
    if t_chunk is None:
        t_chunk = _auto_chunk(T, b_block, itemsize, vmem_budget_bytes)
    n_chunks = -(-T // t_chunk)           # cdiv; padded steps are sliced off
    T_pad = n_chunks * t_chunk
    m_rows = t_chunk * b_block            # slab rows per chunk (multiple of 8)

    # --- pad hidden/output widths to 128 lanes; matmul operands -> bf16 -----
    w1p = jnp.pad(w1, ((0, 0), (0, H_PAD - HIDDEN))).astype(matmul_dtype)
    w2p = jnp.pad(w2, ((0, H_PAD - HIDDEN),
                       (0, H_PAD - HIDDEN))).astype(matmul_dtype)
    w3p = jnp.pad(w3, ((0, H_PAD - HIDDEN),
                       (0, H_PAD - OUT))).astype(matmul_dtype)
    b1p = jnp.pad(b1, (0, H_PAD - HIDDEN)).reshape(1, H_PAD).astype(jnp.float32)
    b2p = jnp.pad(b2, (0, H_PAD - HIDDEN)).reshape(1, H_PAD).astype(jnp.float32)
    b3p = jnp.pad(b3, (0, H_PAD - OUT)).reshape(1, H_PAD).astype(jnp.float32)

    # --- arrange x as (n_b, T_pad*b_block, D_in), rows time-major per block --
    xp = jnp.zeros((T_pad, B_pad, D_in), matmul_dtype)
    xp = xp.at[:T, :B, :].set(x.astype(matmul_dtype))
    xr = (xp.reshape(T_pad, n_b, b_block, D_in)
            .transpose(1, 0, 2, 3)
            .reshape(n_b, T_pad * b_block, D_in))

    full = lambda shape: pl.BlockSpec(shape, lambda bb, c: tuple(0 for _ in shape))

    packed = pl.pallas_call(
        functools.partial(_snn_kernel, beta=float(beta),
                          t_chunk=t_chunk, b_block=b_block),
        out_shape=jax.ShapeDtypeStruct((n_b, n_chunks, m_rows, 2 * OUT),
                                       jnp.float32),
        grid_spec=pltpu.PrefetchScalarGridSpec(
            num_scalar_prefetch=0,
            grid=(n_b, n_chunks),                       # (batch blocks, time)
            in_specs=[
                pl.BlockSpec((1, m_rows, D_in), lambda bb, c: (bb, c, 0)),  # x
                full((D_in, H_PAD)), full((1, H_PAD)),                      # fc1
                full((H_PAD, H_PAD)), full((1, H_PAD)),                     # fc2
                full((H_PAD, H_PAD)), full((1, H_PAD)),                     # fc3
            ],
            out_specs=pl.BlockSpec((1, 1, m_rows, 2 * OUT),
                                   lambda bb, c: (bb, c, 0, 0)),
            scratch_shapes=[
                pltpu.VMEM((b_block, H_PAD), jnp.float32),   # mem1 (persists)
                pltpu.VMEM((b_block, H_PAD), jnp.float32),   # mem2
                pltpu.VMEM((b_block, H_PAD), jnp.float32),   # mem3
                pltpu.VMEM((m_rows, H_PAD), jnp.float32),    # cur slab (reused)
                pltpu.VMEM((m_rows, H_PAD), matmul_dtype),   # spk slab (reused)
            ],
        ),
        compiler_params=pltpu.CompilerParams(
            # batch blocks are independent (megacore on v7x); time carries the
            # membrane recurrence through scratch -> must stay sequential.
            dimension_semantics=("parallel", "arbitrary"),
            vmem_limit_bytes=48 * 1024 * 1024,           # safe on v5e/v6e/v7x
        ),
    )(xr, w1p, b1p, w2p, b2p, w3p, b3p)

    # --- unpack merged (spk0, spk1, mem0, mem1) slab back to (T, B, 2) x 2 ---
    packed = (packed.reshape(n_b, n_chunks, t_chunk, b_block, 2 * OUT)
                    .transpose(1, 2, 0, 3, 4)
                    .reshape(T_pad, B_pad, 2 * OUT))
    spikes = packed[:T, :B, :OUT]
    mem_rec = packed[:T, :B, OUT:2 * OUT]
    return spikes, mem_rec


def init_params(key, input_neurons):
    """Deterministic PyTorch-style Linear init (U(-1/sqrt(fan_in), ...))."""
    def linear(k, fan_in, fan_out):
        kw, kb = jax.random.split(k)
        bound = 1.0 / np.sqrt(fan_in)
        w = jax.random.uniform(kw, (fan_in, fan_out), jnp.float32, -bound, bound)
        b = jax.random.uniform(kb, (fan_out,), jnp.float32, -bound, bound)
        return w, b

    k1, k2, k3 = jax.random.split(key, 3)
    w1, b1 = linear(k1, input_neurons, HIDDEN)
    w2, b2 = linear(k2, HIDDEN, HIDDEN)
    w3, b3 = linear(k3, HIDDEN, OUT)
    return w1, b1, w2, b2, w3, b3


def snn_reference(x, params, beta, matmul_dtype=jnp.bfloat16):
    """Plain-JAX reference with matmul operands rounded to matmul_dtype
    (so products match the kernel; only f32 accumulation order can differ)."""
    w1, b1, w2, b2, w3, b3 = params
    T, B, _ = x.shape
    cast = lambda a: a.astype(matmul_dtype).astype(jnp.float32)
    w1c, w2c, w3c = cast(w1), cast(w2), cast(w3)
    xc = cast(x)

    def lif(cur, mem):
        m_new = beta * mem + cur - jnp.where(mem > THRESH, THRESH, 0.0)
        spk = (m_new > THRESH).astype(jnp.float32)
        return spk, m_new

    def step(carry, x_t):
        m1, m2, m3 = carry
        s1, m1 = lif(x_t @ w1c + b1, m1)
        s2, m2 = lif(s1 @ w2c + b2, m2)
        s3, m3 = lif(s2 @ w3c + b3, m3)
        return (m1, m2, m3), (s3, m3)

    init = (jnp.zeros((B, HIDDEN)), jnp.zeros((B, HIDDEN)), jnp.zeros((B, OUT)))
    _, (spk, mem) = lax.scan(step, init, xc)
    return spk, mem


def _check(spikes, mem_rec, ref_spk, ref_mem, label):
    spikes, mem_rec = np.asarray(spikes), np.asarray(mem_rec)
    ref_spk, ref_mem = np.asarray(ref_spk), np.asarray(ref_mem)
    mem_err = np.abs(mem_rec - ref_mem)
    # The bulk of entries must match tightly; a small budget absorbs the rare
    # near-threshold spike flip caused by accumulation-order differences in
    # the hard-threshold dynamics (the only legitimate source of divergence).
    assert float(np.median(mem_err)) < 1e-4, f"{label}: membrane mismatch"
    assert float(np.mean(mem_err > 1e-2)) <= 0.25, f"{label}: membrane mismatch"
    spike_mismatch = float(np.mean(np.abs(spikes - ref_spk)))
    assert spike_mismatch <= 0.05, f"{label}: spike mismatch {spike_mismatch}"


if __name__ == "__main__":
    BETA = 0.9
    D_IN = 40
    key = jax.random.PRNGKey(0)
    kx1, kx2, kp = jax.random.split(key, 3)
    params = init_params(kp, D_IN)

    # Config A: awkward sizes — B=6 pads to 8 sublanes, T=18 with a forced
    # t_chunk=8 exercises time padding + multi-chunk membrane-state carry.
    T, B = 18, 6
    x = jax.random.uniform(kx1, (T, B, D_IN), jnp.float32, 0.0, 2.0)
    spikes, mem_rec = snn_forward(x, params, BETA, t_chunk=8)
    spikes = jax.block_until_ready(spikes)
    mem_rec = jax.block_until_ready(mem_rec)
    assert spikes.shape == (T, B, OUT) and mem_rec.shape == (T, B, OUT)
    assert bool(jnp.all(jnp.isfinite(mem_rec)))
    ref_spk, ref_mem = snn_reference(x, params, BETA)
    _check(spikes, mem_rec, ref_spk, ref_mem, "configA")

    # Config B: B=16 auto-splits into two batch blocks (megacore path on v7x);
    # auto (VMEM-budgeted) chunk size -> single time chunk here.
    T, B = 10, 16
    x = jax.random.uniform(kx2, (T, B, D_IN), jnp.float32, 0.0, 2.0)
    spikes, mem_rec = snn_forward(x, params, BETA)
    spikes = jax.block_until_ready(spikes)
    mem_rec = jax.block_until_ready(mem_rec)
    assert spikes.shape == (T, B, OUT) and mem_rec.shape == (T, B, OUT)
    assert bool(jnp.all(jnp.isfinite(mem_rec)))
    ref_spk, ref_mem = snn_reference(x, params, BETA)
    _check(spikes, mem_rec, ref_spk, ref_mem, "configB")

    print("KERNEL_OK")
</pallas_src>

<mosaic_0001>
module attributes {stable_mosaic.version = 11 : i64} {
  func.func @_snn_kernel(%arg0: i32, %arg1: i32, %arg2: memref<1x64x40xbf16, #tpu.memory_space<vmem>>, %arg3: memref<40x128xbf16, #tpu.memory_space<vmem>>, %arg4: memref<1x128xf32, #tpu.memory_space<vmem>>, %arg5: memref<128x128xbf16, #tpu.memory_space<vmem>>, %arg6: memref<1x128xf32, #tpu.memory_space<vmem>>, %arg7: memref<128x128xbf16, #tpu.memory_space<vmem>>, %arg8: memref<1x128xf32, #tpu.memory_space<vmem>>, %arg9: memref<1x1x64x4xf32, #tpu.memory_space<vmem>>, %arg10: memref<8x128xf32, #tpu.memory_space<vmem>>, %arg11: memref<8x128xf32, #tpu.memory_space<vmem>>, %arg12: memref<8x128xf32, #tpu.memory_space<vmem>>, %arg13: memref<64x128xf32, #tpu.memory_space<vmem>>, %arg14: memref<64x128xbf16, #tpu.memory_space<vmem>>) attributes {dimension_semantics = [#tpu.dimension_semantics<parallel>, #tpu.dimension_semantics<arbitrary>], iteration_bounds = array<i64: 1, 3>, scalar_prefetch = 0 : i64, scratch_operands = 5 : i64, tpu.core_type = #tpu.core_type<tc>, window_params = [{transform_indices = @transform_0, window_bounds = array<i64: 1, 64, 40>}, {pipeline_mode = #tpu.pipeline_mode<synchronous>, transform_indices = @transform_1, window_bounds = array<i64: 40, 128>}, {pipeline_mode = #tpu.pipeline_mode<synchronous>, transform_indices = @transform_2, window_bounds = array<i64: 1, 128>}, {pipeline_mode = #tpu.pipeline_mode<synchronous>, transform_indices = @transform_3, window_bounds = array<i64: 128, 128>}, {pipeline_mode = #tpu.pipeline_mode<synchronous>, transform_indices = @transform_4, window_bounds = array<i64: 1, 128>}, {pipeline_mode = #tpu.pipeline_mode<synchronous>, transform_indices = @transform_5, window_bounds = array<i64: 128, 128>}, {pipeline_mode = #tpu.pipeline_mode<synchronous>, transform_indices = @transform_6, window_bounds = array<i64: 1, 128>}, {transform_indices = @transform_7, window_bounds = array<i64: 1, 1, 64, 4>}]} {
    %c0_i32 = arith.constant 0 : i32
    %0 = arith.cmpi eq, %arg1, %c0_i32 : i32
    %1 = arith.extui %0 : i1 to i32
    %c0_i32_0 = arith.constant 0 : i32
    %2 = arith.cmpi ne, %1, %c0_i32_0 : i32
    scf.if %2 {
      %cst_289 = arith.constant 0.000000e+00 : f32
      %567 = vector.broadcast %cst_289 : f32 to vector<8x128xf32>
      %c0_290 = arith.constant 0 : index
      %c0_291 = arith.constant 0 : index
      %568 = vector.load %arg10[%c0_290, %c0_291] : memref<8x128xf32, #tpu.memory_space<vmem>>, vector<8x128xf32>
      tpu.vector_store %arg10[%c0_290, %c0_291], %567 {strides = array<i32>} : memref<8x128xf32, #tpu.memory_space<vmem>>, vector<8x128xf32>,
      %cst_292 = arith.constant 0.000000e+00 : f32
      %569 = vector.broadcast %cst_292 : f32 to vector<8x128xf32>
      %c0_293 = arith.constant 0 : index
      %c0_294 = arith.constant 0 : index
      %570 = vector.load %arg11[%c0_293, %c0_294] : memref<8x128xf32, #tpu.memory_space<vmem>>, vector<8x128xf32>
      tpu.vector_store %arg11[%c0_293, %c0_294], %569 {strides = array<i32>} : memref<8x128xf32, #tpu.memory_space<vmem>>, vector<8x128xf32>,
      %cst_295 = arith.constant 0.000000e+00 : f32
      %571 = vector.broadcast %cst_295 : f32 to vector<8x128xf32>
      %c0_296 = arith.constant 0 : index
      %c0_297 = arith.constant 0 : index
      %572 = vector.load %arg12[%c0_296, %c0_297] : memref<8x128xf32, #tpu.memory_space<vmem>>, vector<8x128xf32>
      tpu.vector_store %arg12[%c0_296, %c0_297], %571 {strides = array<i32>} : memref<8x128xf32, #tpu.memory_space<vmem>>, vector<8x128xf32>,
    } else {
    }
    %c0 = arith.constant 0 : index
    %c0_1 = arith.constant 0 : index
    %c0_2 = arith.constant 0 : index
    %3 = vector.load %arg2[%c0, %c0_1, %c0_2] : memref<1x64x40xbf16, #tpu.memory_space<vmem>>, vector<1x64x40xbf16>
    %4 = vector.shape_cast %3 : vector<1x64x40xbf16> to vector<64x40xbf16>
    %c0_3 = arith.constant 0 : index
    %c0_4 = arith.constant 0 : index
    %5 = vector.load %arg3[%c0_3, %c0_4] : memref<40x128xbf16, #tpu.memory_space<vmem>>, vector<40x128xbf16>
    %cst = arith.constant dense<0.000000e+00> : vector<64x128xf32>
    %6 = tpu.matmul %4, %5, %cst {dimension_numbers = #tpu.dot_dimension_numbers<[1], [0], [0], [1], [0, 0, 1, 1], [], []>} : vector<64x40xbf16>, vector<40x128xbf16>, vector<64x128xf32> -> vector<64x128xf32>
    %c0_5 = arith.constant 0 : index
    %c0_6 = arith.constant 0 : index
    %7 = vector.load %arg4[%c0_5, %c0_6] : memref<1x128xf32, #tpu.memory_space<vmem>>, vector<1x128xf32>
    %8 = vector.broadcast %7 : vector<1x128xf32> to vector<64x128xf32>
    %9 = arith.addf %6, %8 : vector<64x128xf32>
    %c0_7 = arith.constant 0 : index
    %c0_8 = arith.constant 0 : index
    %10 = vector.load %arg13[%c0_7, %c0_8] : memref<64x128xf32, #tpu.memory_space<vmem>>, vector<64x128xf32>
    tpu.vector_store %arg13[%c0_7, %c0_8], %9 {strides = array<i32>} : memref<64x128xf32, #tpu.memory_space<vmem>>, vector<64x128xf32>,
    %c0_9 = arith.constant 0 : index
    %c0_10 = arith.constant 0 : index
    %11 = vector.load %arg10[%c0_9, %c0_10] : memref<8x128xf32, #tpu.memory_space<vmem>>, vector<8x128xf32>
    %c0_i32_11 = arith.constant 0 : i32
    %c8_i32 = arith.constant 8 : i32
    %12 = arith.muli %c0_i32_11, %c8_i32 : i32
    %13 = tpu.assume_multiple %12, 8 : i32
    %14 = arith.index_cast %13 : i32 to index
    %c0_12 = arith.constant 0 : index
    %15 = vector.load %arg13[%14, %c0_12] : memref<64x128xf32, #tpu.memory_space<vmem>>, vector<8x128xf32>
    %cst_13 = arith.constant 0.899999976 : f32
    %16 = vector.broadcast %cst_13 : f32 to vector<8x128xf32>
    %17 = arith.mulf %16, %11 : vector<8x128xf32>
    %18 = arith.addf %17, %15 : vector<8x128xf32>
    %cst_14 = arith.constant 1.000000e+00 : f32
    %19 = vector.broadcast %cst_14 : f32 to vector<8x128xf32>
    %20 = arith.cmpf ogt, %11, %19 : vector<8x128xf32>
    %cst_15 = arith.constant 1.000000e+00 : f32
    %cst_16 = arith.constant 0.000000e+00 : f32
    %21 = vector.broadcast %cst_15 : f32 to vector<8x128xf32>
    %22 = vector.broadcast %cst_16 : f32 to vector<8x128xf32>
    %23 = arith.select %20, %21, %22 : vector<8x128xi1>, vector<8x128xf32>
    %24 = arith.subf %18, %23 : vector<8x128xf32>
    %cst_17 = arith.constant 1.000000e+00 : f32
    %25 = vector.broadcast %cst_17 : f32 to vector<8x128xf32>
    %26 = arith.cmpf ogt, %24, %25 : vector<8x128xf32>
    %27 = arith.extui %26 : vector<8x128xi1> to vector<8x128xi32>
    %28 = arith.sitofp %27 : vector<8x128xi32> to vector<8x128xf32>
    %29 = arith.truncf %28 : vector<8x128xf32> to vector<8x128xbf16>
    %30 = arith.index_cast %13 : i32 to index
    %c0_18 = arith.constant 0 : index
    %31 = vector.load %arg14[%30, %c0_18] : memref<64x128xbf16, #tpu.memory_space<vmem>>, vector<8x128xbf16>
    tpu.vector_store %arg14[%30, %c0_18], %29 {strides = array<i32>} : memref<64x128xbf16, #tpu.memory_space<vmem>>, vector<8x128xbf16>,
    %c1_i32 = arith.constant 1 : i32
    %c8_i32_19 = arith.constant 8 : i32
    %32 = arith.muli %c1_i32, %c8_i32_19 : i32
    %33 = tpu.assume_multiple %32, 8 : i32
    %34 = arith.index_cast %33 : i32 to index
    %c0_20 = arith.constant 0 : index
    %35 = vector.load %arg13[%34, %c0_20] : memref<64x128xf32, #tpu.memory_space<vmem>>, vector<8x128xf32>
    %cst_21 = arith.constant 0.899999976 : f32
    %36 = vector.broadcast %cst_21 : f32 to vector<8x128xf32>
    %37 = arith.mulf %36, %24 : vector<8x128xf32>
    %38 = arith.addf %37, %35 : vector<8x128xf32>
    %cst_22 = arith.constant 1.000000e+00 : f32
    %39 = vector.broadcast %cst_22 : f32 to vector<8x128xf32>
    %40 = arith.cmpf ogt, %24, %39 : vector<8x128xf32>
    %cst_23 = arith.constant 1.000000e+00 : f32
    %cst_24 = arith.constant 0.000000e+00 : f32
    %41 = vector.broadcast %cst_23 : f32 to vector<8x128xf32>
    %42 = vector.broadcast %cst_24 : f32 to vector<8x128xf32>
    %43 = arith.select %40, %41, %42 : vector<8x128xi1>, vector<8x128xf32>
    %44 = arith.subf %38, %43 : vector<8x128xf32>
    %cst_25 = arith.constant 1.000000e+00 : f32
    %45 = vector.broadcast %cst_25 : f32 to vector<8x128xf32>
    %46 = arith.cmpf ogt, %44, %45 : vector<8x128xf32>
    %47 = arith.extui %46 : vector<8x128xi1> to vector<8x128xi32>
    %48 = arith.sitofp %47 : vector<8x128xi32> to vector<8x128xf32>
    %49 = arith.truncf %48 : vector<8x128xf32> to vector<8x128xbf16>
    %50 = arith.index_cast %33 : i32 to index
    %c0_26 = arith.constant 0 : index
    %51 = vector.load %arg14[%50, %c0_26] : memref<64x128xbf16, #tpu.memory_space<vmem>>, vector<8x128xbf16>
    tpu.vector_store %arg14[%50, %c0_26], %49 {strides = array<i32>} : memref<64x128xbf16, #tpu.memory_space<vmem>>, vector<8x128xbf16>,
    %c2_i32 = arith.constant 2 : i32
    %c8_i32_27 = arith.constant 8 : i32
    %52 = arith.muli %c2_i32, %c8_i32_27 : i32
    %53 = tpu.assume_multiple %52, 8 : i32
    %54 = arith.index_cast %53 : i32 to index
    %c0_28 = arith.constant 0 : index
    %55 = vector.load %arg13[%54, %c0_28] : memref<64x128xf32, #tpu.memory_space<vmem>>, vector<8x128xf32>
    %cst_29 = arith.constant 0.899999976 : f32
    %56 = vector.broadcast %cst_29 : f32 to vector<8x128xf32>
    %57 = arith.mulf %56, %44 : vector<8x128xf32>
    %58 = arith.addf %57, %55 : vector<8x128xf32>
    %cst_30 = arith.constant 1.000000e+00 : f32
    %59 = vector.broadcast %cst_30 : f32 to vector<8x128xf32>
    %60 = arith.cmpf ogt, %44, %59 : vector<8x128xf32>
    %cst_31 = arith.constant 1.000000e+00 : f32
    %cst_32 = arith.constant 0.000000e+00 : f32
    %61 = vector.broadcast %cst_31 : f32 to vector<8x128xf32>
    %62 = vector.broadcast %cst_32 : f32 to vector<8x128xf32>
    %63 = arith.select %60, %61, %62 : vector<8x128xi1>, vector<8x128xf32>
    %64 = arith.subf %58, %63 : vector<8x128xf32>
    %cst_33 = arith.constant 1.000000e+00 : f32
    %65 = vector.broadcast %cst_33 : f32 to vector<8x128xf32>
    %66 = arith.cmpf ogt, %64, %65 : vector<8x128xf32>
    %67 = arith.extui %66 : vector<8x128xi1> to vector<8x128xi32>
    %68 = arith.sitofp %67 : vector<8x128xi32> to vector<8x128xf32>
    %69 = arith.truncf %68 : vector<8x128xf32> to vector<8x128xbf16>
    %70 = arith.index_cast %53 : i32 to index
    %c0_34 = arith.constant 0 : index
    %71 = vector.load %arg14[%70, %c0_34] : memref<64x128xbf16, #tpu.memory_space<vmem>>, vector<8x128xbf16>
    tpu.vector_store %arg14[%70, %c0_34], %69 {strides = array<i32>} : memref<64x128xbf16, #tpu.memory_space<vmem>>, vector<8x128xbf16>,
    %c3_i32 = arith.constant 3 : i32
    %c8_i32_35 = arith.constant 8 : i32
    %72 = arith.muli %c3_i32, %c8_i32_35 : i32
    %73 = tpu.assume_multiple %72, 8 : i32
    %74 = arith.index_cast %73 : i32 to index
    %c0_36 = arith.constant 0 : index
    %75 = vector.load %arg13[%74, %c0_36] : memref<64x128xf32, #tpu.memory_space<vmem>>, vector<8x128xf32>
    %cst_37 = arith.constant 0.899999976 : f32
    %76 = vector.broadcast %cst_37 : f32 to vector<8x128xf32>
    %77 = arith.mulf %76, %64 : vector<8x128xf32>
    %78 = arith.addf %77, %75 : vector<8x128xf32>
    %cst_38 = arith.constant 1.000000e+00 : f32
    %79 = vector.broadcast %cst_38 : f32 to vector<8x128xf32>
    %80 = arith.cmpf ogt, %64, %79 : vector<8x128xf32>
    %cst_39 = arith.constant 1.000000e+00 : f32
    %cst_40 = arith.constant 0.000000e+00 : f32
    %81 = vector.broadcast %cst_39 : f32 to vector<8x128xf32>
    %82 = vector.broadcast %cst_40 : f32 to vector<8x128xf32>
    %83 = arith.select %80, %81, %82 : vector<8x128xi1>, vector<8x128xf32>
    %84 = arith.subf %78, %83 : vector<8x128xf32>
    %cst_41 = arith.constant 1.000000e+00 : f32
    %85 = vector.broadcast %cst_41 : f32 to vector<8x128xf32>
    %86 = arith.cmpf ogt, %84, %85 : vector<8x128xf32>
    %87 = arith.extui %86 : vector<8x128xi1> to vector<8x128xi32>
    %88 = arith.sitofp %87 : vector<8x128xi32> to vector<8x128xf32>
    %89 = arith.truncf %88 : vector<8x128xf32> to vector<8x128xbf16>
    %90 = arith.index_cast %73 : i32 to index
    %c0_42 = arith.constant 0 : index
    %91 = vector.load %arg14[%90, %c0_42] : memref<64x128xbf16, #tpu.memory_space<vmem>>, vector<8x128xbf16>
    tpu.vector_store %arg14[%90, %c0_42], %89 {strides = array<i32>} : memref<64x128xbf16, #tpu.memory_space<vmem>>, vector<8x128xbf16>,
    %c4_i32 = arith.constant 4 : i32
    %c8_i32_43 = arith.constant 8 : i32
    %92 = arith.muli %c4_i32, %c8_i32_43 : i32
    %93 = tpu.assume_multiple %92, 8 : i32
    %94 = arith.index_cast %93 : i32 to index
    %c0_44 = arith.constant 0 : index
    %95 = vector.load %arg13[%94, %c0_44] : memref<64x128xf32, #tpu.memory_space<vmem>>, vector<8x128xf32>
    %cst_45 = arith.constant 0.899999976 : f32
    %96 = vector.broadcast %cst_45 : f32 to vector<8x128xf32>
    %97 = arith.mulf %96, %84 : vector<8x128xf32>
    %98 = arith.addf %97, %95 : vector<8x128xf32>
    %cst_46 = arith.constant 1.000000e+00 : f32
    %99 = vector.broadcast %cst_46 : f32 to vector<8x128xf32>
    %100 = arith.cmpf ogt, %84, %99 : vector<8x128xf32>
    %cst_47 = arith.constant 1.000000e+00 : f32
    %cst_48 = arith.constant 0.000000e+00 : f32
    %101 = vector.broadcast %cst_47 : f32 to vector<8x128xf32>
    %102 = vector.broadcast %cst_48 : f32 to vector<8x128xf32>
    %103 = arith.select %100, %101, %102 : vector<8x128xi1>, vector<8x128xf32>
    %104 = arith.subf %98, %103 : vector<8x128xf32>
    %cst_49 = arith.constant 1.000000e+00 : f32
    %105 = vector.broadcast %cst_49 : f32 to vector<8x128xf32>
    %106 = arith.cmpf ogt, %104, %105 : vector<8x128xf32>
    %107 = arith.extui %106 : vector<8x128xi1> to vector<8x128xi32>
    %108 = arith.sitofp %107 : vector<8x128xi32> to vector<8x128xf32>
    %109 = arith.truncf %108 : vector<8x128xf32> to vector<8x128xbf16>
    %110 = arith.index_cast %93 : i32 to index
    %c0_50 = arith.constant 0 : index
    %111 = vector.load %arg14[%110, %c0_50] : memref<64x128xbf16, #tpu.memory_space<vmem>>, vector<8x128xbf16>
    tpu.vector_store %arg14[%110, %c0_50], %109 {strides = array<i32>} : memref<64x128xbf16, #tpu.memory_space<vmem>>, vector<8x128xbf16>,
    %c5_i32 = arith.constant 5 : i32
    %c8_i32_51 = arith.constant 8 : i32
    %112 = arith.muli %c5_i32, %c8_i32_51 : i32
    %113 = tpu.assume_multiple %112, 8 : i32
    %114 = arith.index_cast %113 : i32 to index
    %c0_52 = arith.constant 0 : index
    %115 = vector.load %arg13[%114, %c0_52] : memref<64x128xf32, #tpu.memory_space<vmem>>, vector<8x128xf32>
    %cst_53 = arith.constant 0.899999976 : f32
    %116 = vector.broadcast %cst_53 : f32 to vector<8x128xf32>
    %117 = arith.mulf %116, %104 : vector<8x128xf32>
    %118 = arith.addf %117, %115 : vector<8x128xf32>
    %cst_54 = arith.constant 1.000000e+00 : f32
    %119 = vector.broadcast %cst_54 : f32 to vector<8x128xf32>
    %120 = arith.cmpf ogt, %104, %119 : vector<8x128xf32>
    %cst_55 = arith.constant 1.000000e+00 : f32
    %cst_56 = arith.constant 0.000000e+00 : f32
    %121 = vector.broadcast %cst_55 : f32 to vector<8x128xf32>
    %122 = vector.broadcast %cst_56 : f32 to vector<8x128xf32>
    %123 = arith.select %120, %121, %122 : vector<8x128xi1>, vector<8x128xf32>
    %124 = arith.subf %118, %123 : vector<8x128xf32>
    %cst_57 = arith.constant 1.000000e+00 : f32
    %125 = vector.broadcast %cst_57 : f32 to vector<8x128xf32>
    %126 = arith.cmpf ogt, %124, %125 : vector<8x128xf32>
    %127 = arith.extui %126 : vector<8x128xi1> to vector<8x128xi32>
    %128 = arith.sitofp %127 : vector<8x128xi32> to vector<8x128xf32>
    %129 = arith.truncf %128 : vector<8x128xf32> to vector<8x128xbf16>
    %130 = arith.index_cast %113 : i32 to index
    %c0_58 = arith.constant 0 : index
    %131 = vector.load %arg14[%130, %c0_58] : memref<64x128xbf16, #tpu.memory_space<vmem>>, vector<8x128xbf16>
    tpu.vector_store %arg14[%130, %c0_58], %129 {strides = array<i32>} : memref<64x128xbf16, #tpu.memory_space<vmem>>, vector<8x128xbf16>,
    %c6_i32 = arith.constant 6 : i32
    %c8_i32_59 = arith.constant 8 : i32
    %132 = arith.muli %c6_i32, %c8_i32_59 : i32
    %133 = tpu.assume_multiple %132, 8 : i32
    %134 = arith.index_cast %133 : i32 to index
    %c0_60 = arith.constant 0 : index
    %135 = vector.load %arg13[%134, %c0_60] : memref<64x128xf32, #tpu.memory_space<vmem>>, vector<8x128xf32>
    %cst_61 = arith.constant 0.899999976 : f32
    %136 = vector.broadcast %cst_61 : f32 to vector<8x128xf32>
    %137 = arith.mulf %136, %124 : vector<8x128xf32>
    %138 = arith.addf %137, %135 : vector<8x128xf32>
    %cst_62 = arith.constant 1.000000e+00 : f32
    %139 = vector.broadcast %cst_62 : f32 to vector<8x128xf32>
    %140 = arith.cmpf ogt, %124, %139 : vector<8x128xf32>
    %cst_63 = arith.constant 1.000000e+00 : f32
    %cst_64 = arith.constant 0.000000e+00 : f32
    %141 = vector.broadcast %cst_63 : f32 to vector<8x128xf32>
    %142 = vector.broadcast %cst_64 : f32 to vector<8x128xf32>
    %143 = arith.select %140, %141, %142 : vector<8x128xi1>, vector<8x128xf32>
    %144 = arith.subf %138, %143 : vector<8x128xf32>
    %cst_65 = arith.constant 1.000000e+00 : f32
    %145 = vector.broadcast %cst_65 : f32 to vector<8x128xf32>
    %146 = arith.cmpf ogt, %144, %145 : vector<8x128xf32>
    %147 = arith.extui %146 : vector<8x128xi1> to vector<8x128xi32>
    %148 = arith.sitofp %147 : vector<8x128xi32> to vector<8x128xf32>
    %149 = arith.truncf %148 : vector<8x128xf32> to vector<8x128xbf16>
    %150 = arith.index_cast %133 : i32 to index
    %c0_66 = arith.constant 0 : index
    %151 = vector.load %arg14[%150, %c0_66] : memref<64x128xbf16, #tpu.memory_space<vmem>>, vector<8x128xbf16>
    tpu.vector_store %arg14[%150, %c0_66], %149 {strides = array<i32>} : memref<64x128xbf16, #tpu.memory_space<vmem>>, vector<8x128xbf16>,
    %c7_i32 = arith.constant 7 : i32
    %c8_i32_67 = arith.constant 8 : i32
    %152 = arith.muli %c7_i32, %c8_i32_67 : i32
    %153 = tpu.assume_multiple %152, 8 : i32
    %154 = arith.index_cast %153 : i32 to index
    %c0_68 = arith.constant 0 : index
    %155 = vector.load %arg13[%154, %c0_68] : memref<64x128xf32, #tpu.memory_space<vmem>>, vector<8x128xf32>
    %cst_69 = arith.constant 0.899999976 : f32
    %156 = vector.broadcast %cst_69 : f32 to vector<8x128xf32>
    %157 = arith.mulf %156, %144 : vector<8x128xf32>
    %158 = arith.addf %157, %155 : vector<8x128xf32>
    %cst_70 = arith.constant 1.000000e+00 : f32
    %159 = vector.broadcast %cst_70 : f32 to vector<8x128xf32>
    %160 = arith.cmpf ogt, %144, %159 : vector<8x128xf32>
    %cst_71 = arith.constant 1.000000e+00 : f32
    %cst_72 = arith.constant 0.000000e+00 : f32
    %161 = vector.broadcast %cst_71 : f32 to vector<8x128xf32>
    %162 = vector.broadcast %cst_72 : f32 to vector<8x128xf32>
    %163 = arith.select %160, %161, %162 : vector<8x128xi1>, vector<8x128xf32>
    %164 = arith.subf %158, %163 : vector<8x128xf32>
    %cst_73 = arith.constant 1.000000e+00 : f32
    %165 = vector.broadcast %cst_73 : f32 to vector<8x128xf32>
    %166 = arith.cmpf ogt, %164, %165 : vector<8x128xf32>
    %167 = arith.extui %166 : vector<8x128xi1> to vector<8x128xi32>
    %168 = arith.sitofp %167 : vector<8x128xi32> to vector<8x128xf32>
    %169 = arith.truncf %168 : vector<8x128xf32> to vector<8x128xbf16>
    %170 = arith.index_cast %153 : i32 to index
    %c0_74 = arith.constant 0 : index
    %171 = vector.load %arg14[%170, %c0_74] : memref<64x128xbf16, #tpu.memory_space<vmem>>, vector<8x128xbf16>
    tpu.vector_store %arg14[%170, %c0_74], %169 {strides = array<i32>} : memref<64x128xbf16, #tpu.memory_space<vmem>>, vector<8x128xbf16>,
    %c8_i32_75 = arith.constant 8 : i32
    %c0_76 = arith.constant 0 : index
    %c0_77 = arith.constant 0 : index
    %172 = vector.load %arg10[%c0_76, %c0_77] : memref<8x128xf32, #tpu.memory_space<vmem>>, vector<8x128xf32>
    tpu.vector_store %arg10[%c0_76, %c0_77], %164 {strides = array<i32>} : memref<8x128xf32, #tpu.memory_space<vmem>>, vector<8x128xf32>,
    %c0_78 = arith.constant 0 : index
    %c0_79 = arith.constant 0 : index
    %173 = vector.load %arg14[%c0_78, %c0_79] : memref<64x128xbf16, #tpu.memory_space<vmem>>, vector<64x128xbf16>
    %c0_80 = arith.constant 0 : index
    %c0_81 = arith.constant 0 : index
    %174 = vector.load %arg5[%c0_80, %c0_81] : memref<128x128xbf16, #tpu.memory_space<vmem>>, vector<128x128xbf16>
    %cst_82 = arith.constant dense<0.000000e+00> : vector<64x128xf32>
    %175 = tpu.matmul %173, %174, %cst_82 {dimension_numbers = #tpu.dot_dimension_numbers<[1], [0], [0], [1], [0, 0, 1, 1], [], []>} : vector<64x128xbf16>, vector<128x128xbf16>, vector<64x128xf32> -> vector<64x128xf32>
    %c0_83 = arith.constant 0 : index
    %c0_84 = arith.constant 0 : index
    %176 = vector.load %arg6[%c0_83, %c0_84] : memref<1x128xf32, #tpu.memory_space<vmem>>, vector<1x128xf32>
    %177 = vector.broadcast %176 : vector<1x128xf32> to vector<64x128xf32>
    %178 = arith.addf %175, %177 : vector<64x128xf32>
    %c0_85 = arith.constant 0 : index
    %c0_86 = arith.constant 0 : index
    %179 = vector.load %arg13[%c0_85, %c0_86] : memref<64x128xf32, #tpu.memory_space<vmem>>, vector<64x128xf32>
    tpu.vector_store %arg13[%c0_85, %c0_86], %178 {strides = array<i32>} : memref<64x128xf32, #tpu.memory_space<vmem>>, vector<64x128xf32>,
    %c0_87 = arith.constant 0 : index
    %c0_88 = arith.constant 0 : index
    %180 = vector.load %arg11[%c0_87, %c0_88] : memref<8x128xf32, #tpu.memory_space<vmem>>, vector<8x128xf32>
    %c0_i32_89 = arith.constant 0 : i32
    %c8_i32_90 = arith.constant 8 : i32
    %181 = arith.muli %c0_i32_89, %c8_i32_90 : i32
    %182 = tpu.assume_multiple %181, 8 : i32
    %183 = arith.index_cast %182 : i32 to index
    %c0_91 = arith.constant 0 : index
    %184 = vector.load %arg13[%183, %c0_91] : memref<64x128xf32, #tpu.memory_space<vmem>>, vector<8x128xf32>
    %cst_92 = arith.constant 0.899999976 : f32
    %185 = vector.broadcast %cst_92 : f32 to vector<8x128xf32>
    %186 = arith.mulf %185, %180 : vector<8x128xf32>
    %187 = arith.addf %186, %184 : vector<8x128xf32>
    %cst_93 = arith.constant 1.000000e+00 : f32
    %188 = vector.broadcast %cst_93 : f32 to vector<8x128xf32>
    %189 = arith.cmpf ogt, %180, %188 : vector<8x128xf32>
    %cst_94 = arith.constant 1.000000e+00 : f32
    %cst_95 = arith.constant 0.000000e+00 : f32
    %190 = vector.broadcast %cst_94 : f32 to vector<8x128xf32>
    %191 = vector.broadcast %cst_95 : f32 to vector<8x128xf32>
    %192 = arith.select %189, %190, %191 : vector<8x128xi1>, vector<8x128xf32>
    %193 = arith.subf %187, %192 : vector<8x128xf32>
    %cst_96 = arith.constant 1.000000e+00 : f32
    %194 = vector.broadcast %cst_96 : f32 to vector<8x128xf32>
    %195 = arith.cmpf ogt, %193, %194 : vector<8x128xf32>
    %196 = arith.extui %195 : vector<8x128xi1> to vector<8x128xi32>
    %197 = arith.sitofp %196 : vector<8x128xi32> to vector<8x128xf32>
    %198 = arith.truncf %197 : vector<8x128xf32> to vector<8x128xbf16>
    %199 = arith.index_cast %182 : i32 to index
    %c0_97 = arith.constant 0 : index
    %200 = vector.load %arg14[%199, %c0_97] : memref<64x128xbf16, #tpu.memory_space<vmem>>, vector<8x128xbf16>
    tpu.vector_store %arg14[%199, %c0_97], %198 {strides = array<i32>} : memref<64x128xbf16, #tpu.memory_space<vmem>>, vector<8x128xbf16>,
    %c1_i32_98 = arith.constant 1 : i32
    %c8_i32_99 = arith.constant 8 : i32
    %201 = arith.muli %c1_i32_98, %c8_i32_99 : i32
    %202 = tpu.assume_multiple %201, 8 : i32
    %203 = arith.index_cast %202 : i32 to index
    %c0_100 = arith.constant 0 : index
    %204 = vector.load %arg13[%203, %c0_100] : memref<64x128xf32, #tpu.memory_space<vmem>>, vector<8x128xf32>
    %cst_101 = arith.constant 0.899999976 : f32
    %205 = vector.broadcast %cst_101 : f32 to vector<8x128xf32>
    %206 = arith.mulf %205, %193 : vector<8x128xf32>
    %207 = arith.addf %206, %204 : vector<8x128xf32>
    %cst_102 = arith.constant 1.000000e+00 : f32
    %208 = vector.broadcast %cst_102 : f32 to vector<8x128xf32>
    %209 = arith.cmpf ogt, %193, %208 : vector<8x128xf32>
    %cst_103 = arith.constant 1.000000e+00 : f32
    %cst_104 = arith.constant 0.000000e+00 : f32
    %210 = vector.broadcast %cst_103 : f32 to vector<8x128xf32>
    %211 = vector.broadcast %cst_104 : f32 to vector<8x128xf32>
    %212 = arith.select %209, %210, %211 : vector<8x128xi1>, vector<8x128xf32>
    %213 = arith.subf %207, %212 : vector<8x128xf32>
    %cst_105 = arith.constant 1.000000e+00 : f32
    %214 = vector.broadcast %cst_105 : f32 to vector<8x128xf32>
    %215 = arith.cmpf ogt, %213, %214 : vector<8x128xf32>
    %216 = arith.extui %215 : vector<8x128xi1> to vector<8x128xi32>
    %217 = arith.sitofp %216 : vector<8x128xi32> to vector<8x128xf32>
    %218 = arith.truncf %217 : vector<8x128xf32> to vector<8x128xbf16>
    %219 = arith.index_cast %202 : i32 to index
    %c0_106 = arith.constant 0 : index
    %220 = vector.load %arg14[%219, %c0_106] : memref<64x128xbf16, #tpu.memory_space<vmem>>, vector<8x128xbf16>
    tpu.vector_store %arg14[%219, %c0_106], %218 {strides = array<i32>} : memref<64x128xbf16, #tpu.memory_space<vmem>>, vector<8x128xbf16>,
    %c2_i32_107 = arith.constant 2 : i32
    %c8_i32_108 = arith.constant 8 : i32
    %221 = arith.muli %c2_i32_107, %c8_i32_108 : i32
    %222 = tpu.assume_multiple %221, 8 : i32
    %223 = arith.index_cast %222 : i32 to index
    %c0_109 = arith.constant 0 : index
    %224 = vector.load %arg13[%223, %c0_109] : memref<64x128xf32, #tpu.memory_space<vmem>>, vector<8x128xf32>
    %cst_110 = arith.constant 0.899999976 : f32
    %225 = vector.broadcast %cst_110 : f32 to vector<8x128xf32>
    %226 = arith.mulf %225, %213 : vector<8x128xf32>
    %227 = arith.addf %226, %224 : vector<8x128xf32>
    %cst_111 = arith.constant 1.000000e+00 : f32
    %228 = vector.broadcast %cst_111 : f32 to vector<8x128xf32>
    %229 = arith.cmpf ogt, %213, %228 : vector<8x128xf32>
    %cst_112 = arith.constant 1.000000e+00 : f32
    %cst_113 = arith.constant 0.000000e+00 : f32
    %230 = vector.broadcast %cst_112 : f32 to vector<8x128xf32>
    %231 = vector.broadcast %cst_113 : f32 to vector<8x128xf32>
    %232 = arith.select %229, %230, %231 : vector<8x128xi1>, vector<8x128xf32>
    %233 = arith.subf %227, %232 : vector<8x128xf32>
    %cst_114 = arith.constant 1.000000e+00 : f32
    %234 = vector.broadcast %cst_114 : f32 to vector<8x128xf32>
    %235 = arith.cmpf ogt, %233, %234 : vector<8x128xf32>
    %236 = arith.extui %235 : vector<8x128xi1> to vector<8x128xi32>
    %237 = arith.sitofp %236 : vector<8x128xi32> to vector<8x128xf32>
    %238 = arith.truncf %237 : vector<8x128xf32> to vector<8x128xbf16>
    %239 = arith.index_cast %222 : i32 to index
    %c0_115 = arith.constant 0 : index
    %240 = vector.load %arg14[%239, %c0_115] : memref<64x128xbf16, #tpu.memory_space<vmem>>, vector<8x128xbf16>
    tpu.vector_store %arg14[%239, %c0_115], %238 {strides = array<i32>} : memref<64x128xbf16, #tpu.memory_space<vmem>>, vector<8x128xbf16>,
    %c3_i32_116 = arith.constant 3 : i32
    %c8_i32_117 = arith.constant 8 : i32
    %241 = arith.muli %c3_i32_116, %c8_i32_117 : i32
    %242 = tpu.assume_multiple %241, 8 : i32
    %243 = arith.index_cast %242 : i32 to index
    %c0_118 = arith.constant 0 : index
    %244 = vector.load %arg13[%243, %c0_118] : memref<64x128xf32, #tpu.memory_space<vmem>>, vector<8x128xf32>
    %cst_119 = arith.constant 0.899999976 : f32
    %245 = vector.broadcast %cst_119 : f32 to vector<8x128xf32>
    %246 = arith.mulf %245, %233 : vector<8x128xf32>
    %247 = arith.addf %246, %244 : vector<8x128xf32>
    %cst_120 = arith.constant 1.000000e+00 : f32
    %248 = vector.broadcast %cst_120 : f32 to vector<8x128xf32>
    %249 = arith.cmpf ogt, %233, %248 : vector<8x128xf32>
    %cst_121 = arith.constant 1.000000e+00 : f32
    %cst_122 = arith.constant 0.000000e+00 : f32
    %250 = vector.broadcast %cst_121 : f32 to vector<8x128xf32>
    %251 = vector.broadcast %cst_122 : f32 to vector<8x128xf32>
    %252 = arith.select %249, %250, %251 : vector<8x128xi1>, vector<8x128xf32>
    %253 = arith.subf %247, %252 : vector<8x128xf32>
    %cst_123 = arith.constant 1.000000e+00 : f32
    %254 = vector.broadcast %cst_123 : f32 to vector<8x128xf32>
    %255 = arith.cmpf ogt, %253, %254 : vector<8x128xf32>
    %256 = arith.extui %255 : vector<8x128xi1> to vector<8x128xi32>
    %257 = arith.sitofp %256 : vector<8x128xi32> to vector<8x128xf32>
    %258 = arith.truncf %257 : vector<8x128xf32> to vector<8x128xbf16>
    %259 = arith.index_cast %242 : i32 to index
    %c0_124 = arith.constant 0 : index
    %260 = vector.load %arg14[%259, %c0_124] : memref<64x128xbf16, #tpu.memory_space<vmem>>, vector<8x128xbf16>
    tpu.vector_store %arg14[%259, %c0_124], %258 {strides = array<i32>} : memref<64x128xbf16, #tpu.memory_space<vmem>>, vector<8x128xbf16>,
    %c4_i32_125 = arith.constant 4 : i32
    %c8_i32_126 = arith.constant 8 : i32
    %261 = arith.muli %c4_i32_125, %c8_i32_126 : i32
    %262 = tpu.assume_multiple %261, 8 : i32
    %263 = arith.index_cast %262 : i32 to index
    %c0_127 = arith.constant 0 : index
    %264 = vector.load %arg13[%263, %c0_127] : memref<64x128xf32, #tpu.memory_space<vmem>>, vector<8x128xf32>
    %cst_128 = arith.constant 0.899999976 : f32
    %265 = vector.broadcast %cst_128 : f32 to vector<8x128xf32>
    %266 = arith.mulf %265, %253 : vector<8x128xf32>
    %267 = arith.addf %266, %264 : vector<8x128xf32>
    %cst_129 = arith.constant 1.000000e+00 : f32
    %268 = vector.broadcast %cst_129 : f32 to vector<8x128xf32>
    %269 = arith.cmpf ogt, %253, %268 : vector<8x128xf32>
    %cst_130 = arith.constant 1.000000e+00 : f32
    %cst_131 = arith.constant 0.000000e+00 : f32
    %270 = vector.broadcast %cst_130 : f32 to vector<8x128xf32>
    %271 = vector.broadcast %cst_131 : f32 to vector<8x128xf32>
    %272 = arith.select %269, %270, %271 : vector<8x128xi1>, vector<8x128xf32>
    %273 = arith.subf %267, %272 : vector<8x128xf32>
    %cst_132 = arith.constant 1.000000e+00 : f32
    %274 = vector.broadcast %cst_132 : f32 to vector<8x128xf32>
    %275 = arith.cmpf ogt, %273, %274 : vector<8x128xf32>
    %276 = arith.extui %275 : vector<8x128xi1> to vector<8x128xi32>
    %277 = arith.sitofp %276 : vector<8x128xi32> to vector<8x128xf32>
    %278 = arith.truncf %277 : vector<8x128xf32> to vector<8x128xbf16>
    %279 = arith.index_cast %262 : i32 to index
    %c0_133 = arith.constant 0 : index
    %280 = vector.load %arg14[%279, %c0_133] : memref<64x128xbf16, #tpu.memory_space<vmem>>, vector<8x128xbf16>
    tpu.vector_store %arg14[%279, %c0_133], %278 {strides = array<i32>} : memref<64x128xbf16, #tpu.memory_space<vmem>>, vector<8x128xbf16>,
    %c5_i32_134 = arith.constant 5 : i32
    %c8_i32_135 = arith.constant 8 : i32
    %281 = arith.muli %c5_i32_134, %c8_i32_135 : i32
    %282 = tpu.assume_multiple %281, 8 : i32
    %283 = arith.index_cast %282 : i32 to index
    %c0_136 = arith.constant 0 : index
    %284 = vector.load %arg13[%283, %c0_136] : memref<64x128xf32, #tpu.memory_space<vmem>>, vector<8x128xf32>
    %cst_137 = arith.constant 0.899999976 : f32
    %285 = vector.broadcast %cst_137 : f32 to vector<8x128xf32>
    %286 = arith.mulf %285, %273 : vector<8x128xf32>
    %287 = arith.addf %286, %284 : vector<8x128xf32>
    %cst_138 = arith.constant 1.000000e+00 : f32
    %288 = vector.broadcast %cst_138 : f32 to vector<8x128xf32>
    %289 = arith.cmpf ogt, %273, %288 : vector<8x128xf32>
    %cst_139 = arith.constant 1.000000e+00 : f32
    %cst_140 = arith.constant 0.000000e+00 : f32
    %290 = vector.broadcast %cst_139 : f32 to vector<8x128xf32>
    %291 = vector.broadcast %cst_140 : f32 to vector<8x128xf32>
    %292 = arith.select %289, %290, %291 : vector<8x128xi1>, vector<8x128xf32>
    %293 = arith.subf %287, %292 : vector<8x128xf32>
    %cst_141 = arith.constant 1.000000e+00 : f32
    %294 = vector.broadcast %cst_141 : f32 to vector<8x128xf32>
    %295 = arith.cmpf ogt, %293, %294 : vector<8x128xf32>
    %296 = arith.extui %295 : vector<8x128xi1> to vector<8x128xi32>
    %297 = arith.sitofp %296 : vector<8x128xi32> to vector<8x128xf32>
    %298 = arith.truncf %297 : vector<8x128xf32> to vector<8x128xbf16>
    %299 = arith.index_cast %282 : i32 to index
    %c0_142 = arith.constant 0 : index
    %300 = vector.load %arg14[%299, %c0_142] : memref<64x128xbf16, #tpu.memory_space<vmem>>, vector<8x128xbf16>
    tpu.vector_store %arg14[%299, %c0_142], %298 {strides = array<i32>} : memref<64x128xbf16, #tpu.memory_space<vmem>>, vector<8x128xbf16>,
    %c6_i32_143 = arith.constant 6 : i32
    %c8_i32_144 = arith.constant 8 : i32
    %301 = arith.muli %c6_i32_143, %c8_i32_144 : i32
    %302 = tpu.assume_multiple %301, 8 : i32
    %303 = arith.index_cast %302 : i32 to index
    %c0_145 = arith.constant 0 : index
    %304 = vector.load %arg13[%303, %c0_145] : memref<64x128xf32, #tpu.memory_space<vmem>>, vector<8x128xf32>
    %cst_146 = arith.constant 0.899999976 : f32
    %305 = vector.broadcast %cst_146 : f32 to vector<8x128xf32>
    %306 = arith.mulf %305, %293 : vector<8x128xf32>
    %307 = arith.addf %306, %304 : vector<8x128xf32>
    %cst_147 = arith.constant 1.000000e+00 : f32
    %308 = vector.broadcast %cst_147 : f32 to vector<8x128xf32>
    %309 = arith.cmpf ogt, %293, %308 : vector<8x128xf32>
    %cst_148 = arith.constant 1.000000e+00 : f32
    %cst_149 = arith.constant 0.000000e+00 : f32
    %310 = vector.broadcast %cst_148 : f32 to vector<8x128xf32>
    %311 = vector.broadcast %cst_149 : f32 to vector<8x128xf32>
    %312 = arith.select %309, %310, %311 : vector<8x128xi1>, vector<8x128xf32>
    %313 = arith.subf %307, %312 : vector<8x128xf32>
    %cst_150 = arith.constant 1.000000e+00 : f32
    %314 = vector.broadcast %cst_150 : f32 to vector<8x128xf32>
    %315 = arith.cmpf ogt, %313, %314 : vector<8x128xf32>
    %316 = arith.extui %315 : vector<8x128xi1> to vector<8x128xi32>
    %317 = arith.sitofp %316 : vector<8x128xi32> to vector<8x128xf32>
    %318 = arith.truncf %317 : vector<8x128xf32> to vector<8x128xbf16>
    %319 = arith.index_cast %302 : i32 to index
    %c0_151 = arith.constant 0 : index
    %320 = vector.load %arg14[%319, %c0_151] : memref<64x128xbf16, #tpu.memory_space<vmem>>, vector<8x128xbf16>
    tpu.vector_store %arg14[%319, %c0_151], %318 {strides = array<i32>} : memref<64x128xbf16, #tpu.memory_space<vmem>>, vector<8x128xbf16>,
    %c7_i32_152 = arith.constant 7 : i32
    %c8_i32_153 = arith.constant 8 : i32
    %321 = arith.muli %c7_i32_152, %c8_i32_153 : i32
    %322 = tpu.assume_multiple %321, 8 : i32
    %323 = arith.index_cast %322 : i32 to index
    %c0_154 = arith.constant 0 : index
    %324 = vector.load %arg13[%323, %c0_154] : memref<64x128xf32, #tpu.memory_space<vmem>>, vector<8x128xf32>
    %cst_155 = arith.constant 0.899999976 : f32
    %325 = vector.broadcast %cst_155 : f32 to vector<8x128xf32>
    %326 = arith.mulf %325, %313 : vector<8x128xf32>
    %327 = arith.addf %326, %324 : vector<8x128xf32>
    %cst_156 = arith.constant 1.000000e+00 : f32
    %328 = vector.broadcast %cst_156 : f32 to vector<8x128xf32>
    %329 = arith.cmpf ogt, %313, %328 : vector<8x128xf32>
    %cst_157 = arith.constant 1.000000e+00 : f32
    %cst_158 = arith.constant 0.000000e+00 : f32
    %330 = vector.broadcast %cst_157 : f32 to vector<8x128xf32>
    %331 = vector.broadcast %cst_158 : f32 to vector<8x128xf32>
    %332 = arith.select %329, %330, %331 : vector<8x128xi1>, vector<8x128xf32>
    %333 = arith.subf %327, %332 : vector<8x128xf32>
    %cst_159 = arith.constant 1.000000e+00 : f32
    %334 = vector.broadcast %cst_159 : f32 to vector<8x128xf32>
    %335 = arith.cmpf ogt, %333, %334 : vector<8x128xf32>
    %336 = arith.extui %335 : vector<8x128xi1> to vector<8x128xi32>
    %337 = arith.sitofp %336 : vector<8x128xi32> to vector<8x128xf32>
    %338 = arith.truncf %337 : vector<8x128xf32> to vector<8x128xbf16>
    %339 = arith.index_cast %322 : i32 to index
    %c0_160 = arith.constant 0 : index
    %340 = vector.load %arg14[%339, %c0_160] : memref<64x128xbf16, #tpu.memory_space<vmem>>, vector<8x128xbf16>
    tpu.vector_store %arg14[%339, %c0_160], %338 {strides = array<i32>} : memref<64x128xbf16, #tpu.memory_space<vmem>>, vector<8x128xbf16>,
    %c8_i32_161 = arith.constant 8 : i32
    %c0_162 = arith.constant 0 : index
    %c0_163 = arith.constant 0 : index
    %341 = vector.load %arg11[%c0_162, %c0_163] : memref<8x128xf32, #tpu.memory_space<vmem>>, vector<8x128xf32>
    tpu.vector_store %arg11[%c0_162, %c0_163], %333 {strides = array<i32>} : memref<8x128xf32, #tpu.memory_space<vmem>>, vector<8x128xf32>,
    %c0_164 = arith.constant 0 : index
    %c0_165 = arith.constant 0 : index
    %342 = vector.load %arg14[%c0_164, %c0_165] : memref<64x128xbf16, #tpu.memory_space<vmem>>, vector<64x128xbf16>
    %c0_166 = arith.constant 0 : index
    %c0_167 = arith.constant 0 : index
    %343 = vector.load %arg7[%c0_166, %c0_167] : memref<128x128xbf16, #tpu.memory_space<vmem>>, vector<128x128xbf16>
    %cst_168 = arith.constant dense<0.000000e+00> : vector<64x128xf32>
    %344 = tpu.matmul %342, %343, %cst_168 {dimension_numbers = #tpu.dot_dimension_numbers<[1], [0], [0], [1], [0, 0, 1, 1], [], []>} : vector<64x128xbf16>, vector<128x128xbf16>, vector<64x128xf32> -> vector<64x128xf32>
    %c0_169 = arith.constant 0 : index
    %c0_170 = arith.constant 0 : index
    %345 = vector.load %arg8[%c0_169, %c0_170] : memref<1x128xf32, #tpu.memory_space<vmem>>, vector<1x128xf32>
    %346 = vector.broadcast %345 : vector<1x128xf32> to vector<64x128xf32>
    %347 = arith.addf %344, %346 : vector<64x128xf32>
    %c0_171 = arith.constant 0 : index
    %c0_172 = arith.constant 0 : index
    %348 = vector.load %arg13[%c0_171, %c0_172] : memref<64x128xf32, #tpu.memory_space<vmem>>, vector<64x128xf32>
    tpu.vector_store %arg13[%c0_171, %c0_172], %347 {strides = array<i32>} : memref<64x128xf32, #tpu.memory_space<vmem>>, vector<64x128xf32>,
    %c0_173 = arith.constant 0 : index
    %c0_174 = arith.constant 0 : index
    %349 = vector.load %arg12[%c0_173, %c0_174] : memref<8x128xf32, #tpu.memory_space<vmem>>, vector<8x128xf32>
    %c0_i32_175 = arith.constant 0 : i32
    %c8_i32_176 = arith.constant 8 : i32
    %350 = arith.muli %c0_i32_175, %c8_i32_176 : i32
    %351 = tpu.assume_multiple %350, 8 : i32
    %352 = arith.index_cast %351 : i32 to index
    %c0_177 = arith.constant 0 : index
    %353 = vector.load %arg13[%352, %c0_177] : memref<64x128xf32, #tpu.memory_space<vmem>>, vector<8x128xf32>
    %cst_178 = arith.constant 0.899999976 : f32
    %354 = vector.broadcast %cst_178 : f32 to vector<8x128xf32>
    %355 = arith.mulf %354, %349 : vector<8x128xf32>
    %356 = arith.addf %355, %353 : vector<8x128xf32>
    %cst_179 = arith.constant 1.000000e+00 : f32
    %357 = vector.broadcast %cst_179 : f32 to vector<8x128xf32>
    %358 = arith.cmpf ogt, %349, %357 : vector<8x128xf32>
    %cst_180 = arith.constant 1.000000e+00 : f32
    %cst_181 = arith.constant 0.000000e+00 : f32
    %359 = vector.broadcast %cst_180 : f32 to vector<8x128xf32>
    %360 = vector.broadcast %cst_181 : f32 to vector<8x128xf32>
    %361 = arith.select %358, %359, %360 : vector<8x128xi1>, vector<8x128xf32>
    %362 = arith.subf %356, %361 : vector<8x128xf32>
    %cst_182 = arith.constant 1.000000e+00 : f32
    %363 = vector.broadcast %cst_182 : f32 to vector<8x128xf32>
    %364 = arith.cmpf ogt, %362, %363 : vector<8x128xf32>
    %365 = arith.extui %364 : vector<8x128xi1> to vector<8x128xi32>
    %366 = arith.sitofp %365 : vector<8x128xi32> to vector<8x128xf32>
    %367 = vector.extract_strided_slice %366 {offsets = [0, 0], sizes = [8, 2], strides = [1, 1]} : vector<8x128xf32> to vector<8x2xf32>
    %c0_183 = arith.constant 0 : index
    %c0_184 = arith.constant 0 : index
    %368 = arith.index_cast %351 : i32 to index
    %c0_185 = arith.constant 0 : index
    %369 = vector.load %arg9[%c0_183, %c0_184, %368, %c0_185] : memref<1x1x64x4xf32, #tpu.memory_space<vmem>>, vector<1x1x8x2xf32>
    %370 = vector.shape_cast %369 : vector<1x1x8x2xf32> to vector<8x2xf32>
    %371 = vector.shape_cast %367 : vector<8x2xf32> to vector<1x1x8x2xf32>
    tpu.vector_store %arg9[%c0_183, %c0_184, %368, %c0_185], %371 {strides = array<i32>} : memref<1x1x64x4xf32, #tpu.memory_space<vmem>>, vector<1x1x8x2xf32>,
    %372 = vector.extract_strided_slice %362 {offsets = [0, 0], sizes = [8, 2], strides = [1, 1]} : vector<8x128xf32> to vector<8x2xf32>
    %c0_186 = arith.constant 0 : index
    %c0_187 = arith.constant 0 : index
    %373 = arith.index_cast %351 : i32 to index
    %c2 = arith.constant 2 : index
    %374 = vector.load %arg9[%c0_186, %c0_187, %373, %c2] : memref<1x1x64x4xf32, #tpu.memory_space<vmem>>, vector<1x1x8x2xf32>
    %375 = vector.shape_cast %374 : vector<1x1x8x2xf32> to vector<8x2xf32>
    %376 = vector.shape_cast %372 : vector<8x2xf32> to vector<1x1x8x2xf32>
    tpu.vector_store %arg9[%c0_186, %c0_187, %373, %c2], %376 {strides = array<i32>} : memref<1x1x64x4xf32, #tpu.memory_space<vmem>>, vector<1x1x8x2xf32>,
    %c1_i32_188 = arith.constant 1 : i32
    %c8_i32_189 = arith.constant 8 : i32
    %377 = arith.muli %c1_i32_188, %c8_i32_189 : i32
    %378 = tpu.assume_multiple %377, 8 : i32
    %379 = arith.index_cast %378 : i32 to index
    %c0_190 = arith.constant 0 : index
    %380 = vector.load %arg13[%379, %c0_190] : memref<64x128xf32, #tpu.memory_space<vmem>>, vector<8x128xf32>
    %cst_191 = arith.constant 0.899999976 : f32
    %381 = vector.broadcast %cst_191 : f32 to vector<8x128xf32>
    %382 = arith.mulf %381, %362 : vector<8x128xf32>
    %383 = arith.addf %382, %380 : vector<8x128xf32>
    %cst_192 = arith.constant 1.000000e+00 : f32
    %384 = vector.broadcast %cst_192 : f32 to vector<8x128xf32>
    %385 = arith.cmpf ogt, %362, %384 : vector<8x128xf32>
    %cst_193 = arith.constant 1.000000e+00 : f32
    %cst_194 = arith.constant 0.000000e+00 : f32
    %386 = vector.broadcast %cst_193 : f32 to vector<8x128xf32>
    %387 = vector.broadcast %cst_194 : f32 to vector<8x128xf32>
    %388 = arith.select %385, %386, %387 : vector<8x128xi1>, vector<8x128xf32>
    %389 = arith.subf %383, %388 : vector<8x128xf32>
    %cst_195 = arith.constant 1.000000e+00 : f32
    %390 = vector.broadcast %cst_195 : f32 to vector<8x128xf32>
    %391 = arith.cmpf ogt, %389, %390 : vector<8x128xf32>
    %392 = arith.extui %391 : vector<8x128xi1> to vector<8x128xi32>
    %393 = arith.sitofp %392 : vector<8x128xi32> to vector<8x128xf32>
    %394 = vector.extract_strided_slice %393 {offsets = [0, 0], sizes = [8, 2], strides = [1, 1]} : vector<8x128xf32> to vector<8x2xf32>
    %c0_196 = arith.constant 0 : index
    %c0_197 = arith.constant 0 : index
    %395 = arith.index_cast %378 : i32 to index
    %c0_198 = arith.constant 0 : index
    %396 = vector.load %arg9[%c0_196, %c0_197, %395, %c0_198] : memref<1x1x64x4xf32, #tpu.memory_space<vmem>>, vector<1x1x8x2xf32>
    %397 = vector.shape_cast %396 : vector<1x1x8x2xf32> to vector<8x2xf32>
    %398 = vector.shape_cast %394 : vector<8x2xf32> to vector<1x1x8x2xf32>
    tpu.vector_store %arg9[%c0_196, %c0_197, %395, %c0_198], %398 {strides = array<i32>} : memref<1x1x64x4xf32, #tpu.memory_space<vmem>>, vector<1x1x8x2xf32>,
    %399 = vector.extract_strided_slice %389 {offsets = [0, 0], sizes = [8, 2], strides = [1, 1]} : vector<8x128xf32> to vector<8x2xf32>
    %c0_199 = arith.constant 0 : index
    %c0_200 = arith.constant 0 : index
    %400 = arith.index_cast %378 : i32 to index
    %c2_201 = arith.constant 2 : index
    %401 = vector.load %arg9[%c0_199, %c0_200, %400, %c2_201] : memref<1x1x64x4xf32, #tpu.memory_space<vmem>>, vector<1x1x8x2xf32>
    %402 = vector.shape_cast %401 : vector<1x1x8x2xf32> to vector<8x2xf32>
    %403 = vector.shape_cast %399 : vector<8x2xf32> to vector<1x1x8x2xf32>
    tpu.vector_store %arg9[%c0_199, %c0_200, %400, %c2_201], %403 {strides = array<i32>} : memref<1x1x64x4xf32, #tpu.memory_space<vmem>>, vector<1x1x8x2xf32>,
    %c2_i32_202 = arith.constant 2 : i32
    %c8_i32_203 = arith.constant 8 : i32
    %404 = arith.muli %c2_i32_202, %c8_i32_203 : i32
    %405 = tpu.assume_multiple %404, 8 : i32
    %406 = arith.index_cast %405 : i32 to index
    %c0_204 = arith.constant 0 : index
    %407 = vector.load %arg13[%406, %c0_204] : memref<64x128xf32, #tpu.memory_space<vmem>>, vector<8x128xf32>
    %cst_205 = arith.constant 0.899999976 : f32
    %408 = vector.broadcast %cst_205 : f32 to vector<8x128xf32>
    %409 = arith.mulf %408, %389 : vector<8x128xf32>
    %410 = arith.addf %409, %407 : vector<8x128xf32>
    %cst_206 = arith.constant 1.000000e+00 : f32
    %411 = vector.broadcast %cst_206 : f32 to vector<8x128xf32>
    %412 = arith.cmpf ogt, %389, %411 : vector<8x128xf32>
    %cst_207 = arith.constant 1.000000e+00 : f32
    %cst_208 = arith.constant 0.000000e+00 : f32
    %413 = vector.broadcast %cst_207 : f32 to vector<8x128xf32>
    %414 = vector.broadcast %cst_208 : f32 to vector<8x128xf32>
    %415 = arith.select %412, %413, %414 : vector<8x128xi1>, vector<8x128xf32>
    %416 = arith.subf %410, %415 : vector<8x128xf32>
    %cst_209 = arith.constant 1.000000e+00 : f32
    %417 = vector.broadcast %cst_209 : f32 to vector<8x128xf32>
    %418 = arith.cmpf ogt, %416, %417 : vector<8x128xf32>
    %419 = arith.extui %418 : vector<8x128xi1> to vector<8x128xi32>
    %420 = arith.sitofp %419 : vector<8x128xi32> to vector<8x128xf32>
    %421 = vector.extract_strided_slice %420 {offsets = [0, 0], sizes = [8, 2], strides = [1, 1]} : vector<8x128xf32> to vector<8x2xf32>
    %c0_210 = arith.constant 0 : index
    %c0_211 = arith.constant 0 : index
    %422 = arith.index_cast %405 : i32 to index
    %c0_212 = arith.constant 0 : index
    %423 = vector.load %arg9[%c0_210, %c0_211, %422, %c0_212] : memref<1x1x64x4xf32, #tpu.memory_space<vmem>>, vector<1x1x8x2xf32>
    %424 = vector.shape_cast %423 : vector<1x1x8x2xf32> to vector<8x2xf32>
    %425 = vector.shape_cast %421 : vector<8x2xf32> to vector<1x1x8x2xf32>
    tpu.vector_store %arg9[%c0_210, %c0_211, %422, %c0_212], %425 {strides = array<i32>} : memref<1x1x64x4xf32, #tpu.memory_space<vmem>>, vector<1x1x8x2xf32>,
    %426 = vector.extract_strided_slice %416 {offsets = [0, 0], sizes = [8, 2], strides = [1, 1]} : vector<8x128xf32> to vector<8x2xf32>
    %c0_213 = arith.constant 0 : index
    %c0_214 = arith.constant 0 : index
    %427 = arith.index_cast %405 : i32 to index
    %c2_215 = arith.constant 2 : index
    %428 = vector.load %arg9[%c0_213, %c0_214, %427, %c2_215] : memref<1x1x64x4xf32, #tpu.memory_space<vmem>>, vector<1x1x8x2xf32>
    %429 = vector.shape_cast %428 : vector<1x1x8x2xf32> to vector<8x2xf32>
    %430 = vector.shape_cast %426 : vector<8x2xf32> to vector<1x1x8x2xf32>
    tpu.vector_store %arg9[%c0_213, %c0_214, %427, %c2_215], %430 {strides = array<i32>} : memref<1x1x64x4xf32, #tpu.memory_space<vmem>>, vector<1x1x8x2xf32>,
    %c3_i32_216 = arith.constant 3 : i32
    %c8_i32_217 = arith.constant 8 : i32
    %431 = arith.muli %c3_i32_216, %c8_i32_217 : i32
    %432 = tpu.assume_multiple %431, 8 : i32
    %433 = arith.index_cast %432 : i32 to index
    %c0_218 = arith.constant 0 : index
    %434 = vector.load %arg13[%433, %c0_218] : memref<64x128xf32, #tpu.memory_space<vmem>>, vector<8x128xf32>
    %cst_219 = arith.constant 0.899999976 : f32
    %435 = vector.broadcast %cst_219 : f32 to vector<8x128xf32>
    %436 = arith.mulf %435, %416 : vector<8x128xf32>
    %437 = arith.addf %436, %434 : vector<8x128xf32>
    %cst_220 = arith.constant 1.000000e+00 : f32
    %438 = vector.broadcast %cst_220 : f32 to vector<8x128xf32>
    %439 = arith.cmpf ogt, %416, %438 : vector<8x128xf32>
    %cst_221 = arith.constant 1.000000e+00 : f32
    %cst_222 = arith.constant 0.000000e+00 : f32
    %440 = vector.broadcast %cst_221 : f32 to vector<8x128xf32>
    %441 = vector.broadcast %cst_222 : f32 to vector<8x128xf32>
    %442 = arith.select %439, %440, %441 : vector<8x128xi1>, vector<8x128xf32>
    %443 = arith.subf %437, %442 : vector<8x128xf32>
    %cst_223 = arith.constant 1.000000e+00 : f32
    %444 = vector.broadcast %cst_223 : f32 to vector<8x128xf32>
    %445 = arith.cmpf ogt, %443, %444 : vector<8x128xf32>
    %446 = arith.extui %445 : vector<8x128xi1> to vector<8x128xi32>
    %447 = arith.sitofp %446 : vector<8x128xi32> to vector<8x128xf32>
    %448 = vector.extract_strided_slice %447 {offsets = [0, 0], sizes = [8, 2], strides = [1, 1]} : vector<8x128xf32> to vector<8x2xf32>
    %c0_224 = arith.constant 0 : index
    %c0_225 = arith.constant 0 : index
    %449 = arith.index_cast %432 : i32 to index
    %c0_226 = arith.constant 0 : index
    %450 = vector.load %arg9[%c0_224, %c0_225, %449, %c0_226] : memref<1x1x64x4xf32, #tpu.memory_space<vmem>>, vector<1x1x8x2xf32>
    %451 = vector.shape_cast %450 : vector<1x1x8x2xf32> to vector<8x2xf32>
    %452 = vector.shape_cast %448 : vector<8x2xf32> to vector<1x1x8x2xf32>
    tpu.vector_store %arg9[%c0_224, %c0_225, %449, %c0_226], %452 {strides = array<i32>} : memref<1x1x64x4xf32, #tpu.memory_space<vmem>>, vector<1x1x8x2xf32>,
    %453 = vector.extract_strided_slice %443 {offsets = [0, 0], sizes = [8, 2], strides = [1, 1]} : vector<8x128xf32> to vector<8x2xf32>
    %c0_227 = arith.constant 0 : index
    %c0_228 = arith.constant 0 : index
    %454 = arith.index_cast %432 : i32 to index
    %c2_229 = arith.constant 2 : index
    %455 = vector.load %arg9[%c0_227, %c0_228, %454, %c2_229] : memref<1x1x64x4xf32, #tpu.memory_space<vmem>>, vector<1x1x8x2xf32>
    %456 = vector.shape_cast %455 : vector<1x1x8x2xf32> to vector<8x2xf32>
    %457 = vector.shape_cast %453 : vector<8x2xf32> to vector<1x1x8x2xf32>
    tpu.vector_store %arg9[%c0_227, %c0_228, %454, %c2_229], %457 {strides = array<i32>} : memref<1x1x64x4xf32, #tpu.memory_space<vmem>>, vector<1x1x8x2xf32>,
    %c4_i32_230 = arith.constant 4 : i32
    %c8_i32_231 = arith.constant 8 : i32
    %458 = arith.muli %c4_i32_230, %c8_i32_231 : i32
    %459 = tpu.assume_multiple %458, 8 : i32
    %460 = arith.index_cast %459 : i32 to index
    %c0_232 = arith.constant 0 : index
    %461 = vector.load %arg13[%460, %c0_232] : memref<64x128xf32, #tpu.memory_space<vmem>>, vector<8x128xf32>
    %cst_233 = arith.constant 0.899999976 : f32
    %462 = vector.broadcast %cst_233 : f32 to vector<8x128xf32>
    %463 = arith.mulf %462, %443 : vector<8x128xf32>
    %464 = arith.addf %463, %461 : vector<8x128xf32>
    %cst_234 = arith.constant 1.000000e+00 : f32
    %465 = vector.broadcast %cst_234 : f32 to vector<8x128xf32>
    %466 = arith.cmpf ogt, %443, %465 : vector<8x128xf32>
    %cst_235 = arith.constant 1.000000e+00 : f32
    %cst_236 = arith.constant 0.000000e+00 : f32
    %467 = vector.broadcast %cst_235 : f32 to vector<8x128xf32>
    %468 = vector.broadcast %cst_236 : f32 to vector<8x128xf32>
    %469 = arith.select %466, %467, %468 : vector<8x128xi1>, vector<8x128xf32>
    %470 = arith.subf %464, %469 : vector<8x128xf32>
    %cst_237 = arith.constant 1.000000e+00 : f32
    %471 = vector.broadcast %cst_237 : f32 to vector<8x128xf32>
    %472 = arith.cmpf ogt, %470, %471 : vector<8x128xf32>
    %473 = arith.extui %472 : vector<8x128xi1> to vector<8x128xi32>
    %474 = arith.sitofp %473 : vector<8x128xi32> to vector<8x128xf32>
    %475 = vector.extract_strided_slice %474 {offsets = [0, 0], sizes = [8, 2], strides = [1, 1]} : vector<8x128xf32> to vector<8x2xf32>
    %c0_238 = arith.constant 0 : index
    %c0_239 = arith.constant 0 : index
    %476 = arith.index_cast %459 : i32 to index
    %c0_240 = arith.constant 0 : index
    %477 = vector.load %arg9[%c0_238, %c0_239, %476, %c0_240] : memref<1x1x64x4xf32, #tpu.memory_space<vmem>>, vector<1x1x8x2xf32>
    %478 = vector.shape_cast %477 : vector<1x1x8x2xf32> to vector<8x2xf32>
    %479 = vector.shape_cast %475 : vector<8x2xf32> to vector<1x1x8x2xf32>
    tpu.vector_store %arg9[%c0_238, %c0_239, %476, %c0_240], %479 {strides = array<i32>} : memref<1x1x64x4xf32, #tpu.memory_space<vmem>>, vector<1x1x8x2xf32>,
    %480 = vector.extract_strided_slice %470 {offsets = [0, 0], sizes = [8, 2], strides = [1, 1]} : vector<8x128xf32> to vector<8x2xf32>
    %c0_241 = arith.constant 0 : index
    %c0_242 = arith.constant 0 : index
    %481 = arith.index_cast %459 : i32 to index
    %c2_243 = arith.constant 2 : index
    %482 = vector.load %arg9[%c0_241, %c0_242, %481, %c2_243] : memref<1x1x64x4xf32, #tpu.memory_space<vmem>>, vector<1x1x8x2xf32>
    %483 = vector.shape_cast %482 : vector<1x1x8x2xf32> to vector<8x2xf32>
    %484 = vector.shape_cast %480 : vector<8x2xf32> to vector<1x1x8x2xf32>
    tpu.vector_store %arg9[%c0_241, %c0_242, %481, %c2_243], %484 {strides = array<i32>} : memref<1x1x64x4xf32, #tpu.memory_space<vmem>>, vector<1x1x8x2xf32>,
    %c5_i32_244 = arith.constant 5 : i32
    %c8_i32_245 = arith.constant 8 : i32
    %485 = arith.muli %c5_i32_244, %c8_i32_245 : i32
    %486 = tpu.assume_multiple %485, 8 : i32
    %487 = arith.index_cast %486 : i32 to index
    %c0_246 = arith.constant 0 : index
    %488 = vector.load %arg13[%487, %c0_246] : memref<64x128xf32, #tpu.memory_space<vmem>>, vector<8x128xf32>
    %cst_247 = arith.constant 0.899999976 : f32
    %489 = vector.broadcast %cst_247 : f32 to vector<8x128xf32>
    %490 = arith.mulf %489, %470 : vector<8x128xf32>
    %491 = arith.addf %490, %488 : vector<8x128xf32>
    %cst_248 = arith.constant 1.000000e+00 : f32
    %492 = vector.broadcast %cst_248 : f32 to vector<8x128xf32>
    %493 = arith.cmpf ogt, %470, %492 : vector<8x128xf32>
    %cst_249 = arith.constant 1.000000e+00 : f32
    %cst_250 = arith.constant 0.000000e+00 : f32
    %494 = vector.broadcast %cst_249 : f32 to vector<8x128xf32>
    %495 = vector.broadcast %cst_250 : f32 to vector<8x128xf32>
    %496 = arith.select %493, %494, %495 : vector<8x128xi1>, vector<8x128xf32>
    %497 = arith.subf %491, %496 : vector<8x128xf32>
    %cst_251 = arith.constant 1.000000e+00 : f32
    %498 = vector.broadcast %cst_251 : f32 to vector<8x128xf32>
    %499 = arith.cmpf ogt, %497, %498 : vector<8x128xf32>
    %500 = arith.extui %499 : vector<8x128xi1> to vector<8x128xi32>
    %501 = arith.sitofp %500 : vector<8x128xi32> to vector<8x128xf32>
    %502 = vector.extract_strided_slice %501 {offsets = [0, 0], sizes = [8, 2], strides = [1, 1]} : vector<8x128xf32> to vector<8x2xf32>
    %c0_252 = arith.constant 0 : index
    %c0_253 = arith.constant 0 : index
    %503 = arith.index_cast %486 : i32 to index
    %c0_254 = arith.constant 0 : index
    %504 = vector.load %arg9[%c0_252, %c0_253, %503, %c0_254] : memref<1x1x64x4xf32, #tpu.memory_space<vmem>>, vector<1x1x8x2xf32>
    %505 = vector.shape_cast %504 : vector<1x1x8x2xf32> to vector<8x2xf32>
    %506 = vector.shape_cast %502 : vector<8x2xf32> to vector<1x1x8x2xf32>
    tpu.vector_store %arg9[%c0_252, %c0_253, %503, %c0_254], %506 {strides = array<i32>} : memref<1x1x64x4xf32, #tpu.memory_space<vmem>>, vector<1x1x8x2xf32>,
    %507 = vector.extract_strided_slice %497 {offsets = [0, 0], sizes = [8, 2], strides = [1, 1]} : vector<8x128xf32> to vector<8x2xf32>
    %c0_255 = arith.constant 0 : index
    %c0_256 = arith.constant 0 : index
    %508 = arith.index_cast %486 : i32 to index
    %c2_257 = arith.constant 2 : index
    %509 = vector.load %arg9[%c0_255, %c0_256, %508, %c2_257] : memref<1x1x64x4xf32, #tpu.memory_space<vmem>>, vector<1x1x8x2xf32>
    %510 = vector.shape_cast %509 : vector<1x1x8x2xf32> to vector<8x2xf32>
    %511 = vector.shape_cast %507 : vector<8x2xf32> to vector<1x1x8x2xf32>
    tpu.vector_store %arg9[%c0_255, %c0_256, %508, %c2_257], %511 {strides = array<i32>} : memref<1x1x64x4xf32, #tpu.memory_space<vmem>>, vector<1x1x8x2xf32>,
    %c6_i32_258 = arith.constant 6 : i32
    %c8_i32_259 = arith.constant 8 : i32
    %512 = arith.muli %c6_i32_258, %c8_i32_259 : i32
    %513 = tpu.assume_multiple %512, 8 : i32
    %514 = arith.index_cast %513 : i32 to index
    %c0_260 = arith.constant 0 : index
    %515 = vector.load %arg13[%514, %c0_260] : memref<64x128xf32, #tpu.memory_space<vmem>>, vector<8x128xf32>
    %cst_261 = arith.constant 0.899999976 : f32
    %516 = vector.broadcast %cst_261 : f32 to vector<8x128xf32>
    %517 = arith.mulf %516, %497 : vector<8x128xf32>
    %518 = arith.addf %517, %515 : vector<8x128xf32>
    %cst_262 = arith.constant 1.000000e+00 : f32
    %519 = vector.broadcast %cst_262 : f32 to vector<8x128xf32>
    %520 = arith.cmpf ogt, %497, %519 : vector<8x128xf32>
    %cst_263 = arith.constant 1.000000e+00 : f32
    %cst_264 = arith.constant 0.000000e+00 : f32
    %521 = vector.broadcast %cst_263 : f32 to vector<8x128xf32>
    %522 = vector.broadcast %cst_264 : f32 to vector<8x128xf32>
    %523 = arith.select %520, %521, %522 : vector<8x128xi1>, vector<8x128xf32>
    %524 = arith.subf %518, %523 : vector<8x128xf32>
    %cst_265 = arith.constant 1.000000e+00 : f32
    %525 = vector.broadcast %cst_265 : f32 to vector<8x128xf32>
    %526 = arith.cmpf ogt, %524, %525 : vector<8x128xf32>
    %527 = arith.extui %526 : vector<8x128xi1> to vector<8x128xi32>
    %528 = arith.sitofp %527 : vector<8x128xi32> to vector<8x128xf32>
    %529 = vector.extract_strided_slice %528 {offsets = [0, 0], sizes = [8, 2], strides = [1, 1]} : vector<8x128xf32> to vector<8x2xf32>
    %c0_266 = arith.constant 0 : index
    %c0_267 = arith.constant 0 : index
    %530 = arith.index_cast %513 : i32 to index
    %c0_268 = arith.constant 0 : index
    %531 = vector.load %arg9[%c0_266, %c0_267, %530, %c0_268] : memref<1x1x64x4xf32, #tpu.memory_space<vmem>>, vector<1x1x8x2xf32>
    %532 = vector.shape_cast %531 : vector<1x1x8x2xf32> to vector<8x2xf32>
    %533 = vector.shape_cast %529 : vector<8x2xf32> to vector<1x1x8x2xf32>
    tpu.vector_store %arg9[%c0_266, %c0_267, %530, %c0_268], %533 {strides = array<i32>} : memref<1x1x64x4xf32, #tpu.memory_space<vmem>>, vector<1x1x8x2xf32>,
    %534 = vector.extract_strided_slice %524 {offsets = [0, 0], sizes = [8, 2], strides = [1, 1]} : vector<8x128xf32> to vector<8x2xf32>
    %c0_269 = arith.constant 0 : index
    %c0_270 = arith.constant 0 : index
    %535 = arith.index_cast %513 : i32 to index
    %c2_271 = arith.constant 2 : index
    %536 = vector.load %arg9[%c0_269, %c0_270, %535, %c2_271] : memref<1x1x64x4xf32, #tpu.memory_space<vmem>>, vector<1x1x8x2xf32>
    %537 = vector.shape_cast %536 : vector<1x1x8x2xf32> to vector<8x2xf32>
    %538 = vector.shape_cast %534 : vector<8x2xf32> to vector<1x1x8x2xf32>
    tpu.vector_store %arg9[%c0_269, %c0_270, %535, %c2_271], %538 {strides = array<i32>} : memref<1x1x64x4xf32, #tpu.memory_space<vmem>>, vector<1x1x8x2xf32>,
    %c7_i32_272 = arith.constant 7 : i32
    %c8_i32_273 = arith.constant 8 : i32
    %539 = arith.muli %c7_i32_272, %c8_i32_273 : i32
    %540 = tpu.assume_multiple %539, 8 : i32
    %541 = arith.index_cast %540 : i32 to index
    %c0_274 = arith.constant 0 : index
    %542 = vector.load %arg13[%541, %c0_274] : memref<64x128xf32, #tpu.memory_space<vmem>>, vector<8x128xf32>
    %cst_275 = arith.constant 0.899999976 : f32
    %543 = vector.broadcast %cst_275 : f32 to vector<8x128xf32>
    %544 = arith.mulf %543, %524 : vector<8x128xf32>
    %545 = arith.addf %544, %542 : vector<8x128xf32>
    %cst_276 = arith.constant 1.000000e+00 : f32
    %546 = vector.broadcast %cst_276 : f32 to vector<8x128xf32>
    %547 = arith.cmpf ogt, %524, %546 : vector<8x128xf32>
    %cst_277 = arith.constant 1.000000e+00 : f32
    %cst_278 = arith.constant 0.000000e+00 : f32
    %548 = vector.broadcast %cst_277 : f32 to vector<8x128xf32>
    %549 = vector.broadcast %cst_278 : f32 to vector<8x128xf32>
    %550 = arith.select %547, %548, %549 : vector<8x128xi1>, vector<8x128xf32>
    %551 = arith.subf %545, %550 : vector<8x128xf32>
    %cst_279 = arith.constant 1.000000e+00 : f32
    %552 = vector.broadcast %cst_279 : f32 to vector<8x128xf32>
    %553 = arith.cmpf ogt, %551, %552 : vector<8x128xf32>
    %554 = arith.extui %553 : vector<8x128xi1> to vector<8x128xi32>
    %555 = arith.sitofp %554 : vector<8x128xi32> to vector<8x128xf32>
    %556 = vector.extract_strided_slice %555 {offsets = [0, 0], sizes = [8, 2], strides = [1, 1]} : vector<8x128xf32> to vector<8x2xf32>
    %c0_280 = arith.constant 0 : index
    %c0_281 = arith.constant 0 : index
    %557 = arith.index_cast %540 : i32 to index
    %c0_282 = arith.constant 0 : index
    %558 = vector.load %arg9[%c0_280, %c0_281, %557, %c0_282] : memref<1x1x64x4xf32, #tpu.memory_space<vmem>>, vector<1x1x8x2xf32>
    %559 = vector.shape_cast %558 : vector<1x1x8x2xf32> to vector<8x2xf32>
    %560 = vector.shape_cast %556 : vector<8x2xf32> to vector<1x1x8x2xf32>
    tpu.vector_store %arg9[%c0_280, %c0_281, %557, %c0_282], %560 {strides = array<i32>} : memref<1x1x64x4xf32, #tpu.memory_space<vmem>>, vector<1x1x8x2xf32>,
    %561 = vector.extract_strided_slice %551 {offsets = [0, 0], sizes = [8, 2], strides = [1, 1]} : vector<8x128xf32> to vector<8x2xf32>
    %c0_283 = arith.constant 0 : index
    %c0_284 = arith.constant 0 : index
    %562 = arith.index_cast %540 : i32 to index
    %c2_285 = arith.constant 2 : index
    %563 = vector.load %arg9[%c0_283, %c0_284, %562, %c2_285] : memref<1x1x64x4xf32, #tpu.memory_space<vmem>>, vector<1x1x8x2xf32>
    %564 = vector.shape_cast %563 : vector<1x1x8x2xf32> to vector<8x2xf32>
    %565 = vector.shape_cast %561 : vector<8x2xf32> to vector<1x1x8x2xf32>
    tpu.vector_store %arg9[%c0_283, %c0_284, %562, %c2_285], %565 {strides = array<i32>} : memref<1x1x64x4xf32, #tpu.memory_space<vmem>>, vector<1x1x8x2xf32>,
    %c8_i32_286 = arith.constant 8 : i32
    %c0_287 = arith.constant 0 : index
    %c0_288 = arith.constant 0 : index
    %566 = vector.load %arg12[%c0_287, %c0_288] : memref<8x128xf32, #tpu.memory_space<vmem>>, vector<8x128xf32>
    tpu.vector_store %arg12[%c0_287, %c0_288], %551 {strides = array<i32>} : memref<8x128xf32, #tpu.memory_space<vmem>>, vector<8x128xf32>,
    return
  }
  func.func @transform_0(%arg0: i32, %arg1: i32) -> (i32, i32, i32) {
    %c0_i32 = arith.constant 0 : i32
    %c0_i32_0 = arith.constant 0 : i32
    return %arg0, %arg1, %c0_i32 : i32, i32, i32
  }
  func.func @transform_1(%arg0: i32, %arg1: i32) -> (i32, i32) {
    %c0_i32 = arith.constant 0 : i32
    %c0_i32_0 = arith.constant 0 : i32
    %c0_i32_1 = arith.constant 0 : i32
    return %c0_i32, %c0_i32_0 : i32, i32
  }
  func.func @transform_2(%arg0: i32, %arg1: i32) -> (i32, i32) {
    %c0_i32 = arith.constant 0 : i32
    %c0_i32_0 = arith.constant 0 : i32
    %c0_i32_1 = arith.constant 0 : i32
    return %c0_i32, %c0_i32_0 : i32, i32
  }
  func.func @transform_3(%arg0: i32, %arg1: i32) -> (i32, i32) {
    %c0_i32 = arith.constant 0 : i32
    %c0_i32_0 = arith.constant 0 : i32
    %c0_i32_1 = arith.constant 0 : i32
    return %c0_i32, %c0_i32_0 : i32, i32
  }
  func.func @transform_4(%arg0: i32, %arg1: i32) -> (i32, i32) {
    %c0_i32 = arith.constant 0 : i32
    %c0_i32_0 = arith.constant 0 : i32
    %c0_i32_1 = arith.constant 0 : i32
    return %c0_i32, %c0_i32_0 : i32, i32
  }
  func.func @transform_5(%arg0: i32, %arg1: i32) -> (i32, i32) {
    %c0_i32 = arith.constant 0 : i32
    %c0_i32_0 = arith.constant 0 : i32
    %c0_i32_1 = arith.constant 0 : i32
    return %c0_i32, %c0_i32_0 : i32, i32
  }
  func.func @transform_6(%arg0: i32, %arg1: i32) -> (i32, i32) {
    %c0_i32 = arith.constant 0 : i32
    %c0_i32_0 = arith.constant 0 : i32
    %c0_i32_1 = arith.constant 0 : i32
    return %c0_i32, %c0_i32_0 : i32, i32
  }
  func.func @transform_7(%arg0: i32, %arg1: i32) -> (i32, i32, i32, i32) {
    %c0_i32 = arith.constant 0 : i32
    %c0_i32_0 = arith.constant 0 : i32
    %c0_i32_1 = arith.constant 0 : i32
    return %arg0, %arg1, %c0_i32, %c0_i32_0 : i32, i32, i32, i32
  }
}

</mosaic_0001>

<bundles_post_ra>
// kernel: tpu_custom_call.1
= control target key start
LH: loop header
LB: loop body
LE: loop exit
PB: predicated region body
PF: predicated region fallthrough
CT: control target
= control target key end

     0   :  { %12 = vsyncpa [#allocation8], 0  ;;  %s1599_s24 = smov 0   ;;  %s1601_s25 = smov 0   ;;  %s1806_s0 = inlined_call_operand.vmem [shape: bf16[1,192,40], index: 0, kind: input, shape index: {}]   ;;  %s1807_s1 = inlined_call_operand.hbm [shape: bf16[40,128], index: 1, kind: input, shape index: {}]   ;;  %s1808_s2 = inlined_call_operand.vmem [shape: f32[1,128], index: 2, kind: input, shape index: {}]   ;;  %s1809_s3 = inlined_call_operand.vmem [shape: bf16[128,128], index: 3, kind: input, shape index: {}]   ;;  %s1810_s4 = inlined_call_operand.vmem [shape: f32[1,128], index: 4, kind: input, shape index: {}]   ;;  %s1811_s5 = inlined_call_operand.vmem [shape: bf16[128,128], index: 5, kind: input, shape index: {}]   ;;  %s1812_s6 = inlined_call_operand.vmem [shape: f32[1,128], index: 6, kind: input, shape index: {}]   ;;  %s1813_s7 = inlined_call_operand.vmem [shape: f32[1,3,64,4], index: 7, kind: output, shape index: {}]  }
   0x1   :  { %s1603_s26 = smov 0  }
   0x2 LB: > { %s1243_s27 = sadd.s32 4294967295, %s1551_s26   ;;  %s27_s28 = sadd.s32 1, %s1547_s25  ;;  %s1551_s26 = sphi %s1603_s26, %s18_s26   ;;  %s1547_s25 = sphi %s1601_s25, %s1817_s25   ;;  %s1543_s24 = sphi %s1599_s24, %s1816_s24  }
   0x3   : > { %p28_p0 = scmp.ge.s32.totalorder %s27_s28, 3  ;;  %p1245_p1 = scmp.ge.s32.totalorder %s1551_s26, 1 }
   0x4   : > { %p217_p2 = scmp.lt.s32.totalorder %s1551_s26, 4  ;;  %p1624_p4 = scmp.eq.s32.totalorder %s1243_s27, 0 }
   0x5   : > { %s1819_s28 = smov (%p28_p0, %s27_s28), 0  ;;  %s1553_s8 = smov [#allocation7]  }
   0x6   : > { %p1620_p3 = pnand %p1245_p1, %p217_p2  ;;  %s229_s9 = sshll.u32 %s1553_s8, 4  ;;  %s230_s9 = int_to_ptr.vmem [resolvable:$true] %s229_s9 }
   0x7   : > { %s1510_s10 = scalar_lea.vmem %s230_s9, 320  ;;  %p1518_p11 = scmp.lt.s32.totalorder %s230_s9, %s230_s9 }
   0x8   : > { %p1432_p5 = pneg %p1620_p3  ;;  %p1511_p8 = scmp.ne.s32.totalorder %s230_s9, %s1510_s10 }
   0x9   : > { %p1519_p12 = scmp.lt.s32.totalorder %s1510_s10, %s1510_s10 }
   0xa   : > { %p1433_p6 = pnand %p1624_p4, %p1432_p5 }
   0xb   : > { %p1520_p13 = por %p1519_p12, %p1518_p11 }
   0xc   : > { %p1501_p7 = pneg %p1433_p6 }
   0xe   : > { %p1513_p9 = pnand %p1511_p8, %p1501_p7 }
  0x10   : > { %p1514_p10 = pneg %p1513_p9 }
  0x12   : > { %p1521_p0 = pnand %p1520_p13, %p1514_p10 }
  0x14   : > { %1524 = shalt.err (!%p1521_p0)
}
  0x15   : > { %s1554_s11 = smov 64   ;;  %s1555_s12 = smov 4  }
  0x16   : > { %1435 = dma.hbm_to_vmem [thread:$0]  (!%p1433_p6), %s1807_s1, 320, %s230_s9, [#allocation8], %s1554_s11, %s1554_s11, %s1555_s12  }
  0x17   : > { %273 = sbr.rel (%p1620_p3) target bundleno = 874 (0x36a), region = 48 }
  0x1c   : > { %1538 = dma.done.wait (%p1624_p4), [#allocation8], 320  }
  0x1d   : > { %1540 = vsyncadd (%p1624_p4), [#allocation8], 4294966976  ;;  %s1250_s15 = sshll.u32 %s1543_s24, 3  ;;  %p325_p1 = scmp.lt.s32.totalorder %s1543_s24, 2 }
  0x1e   : > { %p316_p2 = scmp.lt.s32.totalorder %s1250_s15, 23  ;;  %p1254_p3 = scmp.ne.s32.totalorder %s1543_s24, 0 }
  0x1f   : > { %s326_s16 = scalar_select %p325_p1, %s1543_s24, 2 }
  0x20   : > { %s1821_s15 = smov (!%p316_p2, %s1250_s15), 23  ;;  %336 = sbr.rel (%p1254_p3) target bundleno = 40 (0x28), region = 56 }
  0x21   : > { %s1333_s17 = sshll.u32 %s326_s16, 6  ;;  %s1251_s18 = sshll.u32 %s1821_s15, 2 }
  0x22   : > { %s1647_s21 = scalar_lea.vmem %s1813_s7, %s1333_s17  ;;  %s321_s27 = scalar_lea.vmem %s1806_s0, %s1251_s18 }
  0x25   : > { %v1556_v0 = vmov 0.0  }
  0x26   : > { %337 = vst [vmem:[#allocation2] sm:$0xff] %v1556_v0  ;;  %338 = vst [vmem:[#allocation3] sm:$0xff] %v1556_v0 }
  0x27   : > { %339 = vst [vmem:[#allocation4] sm:$0xff] %v1556_v0 }
  0x28 PF: > { %v1468_v1 = vld [vmem:[#allocation7 + $0x10] ss:$0 sps:$4 sm:$0xff]   ;;  %vm408_vm0 = vcmask 1043456   ;;  %v1469_v2 = vld [vmem:[#allocation7 + $0x8] sm:$0xff]   ;;  %vm395_vm1 = vcmask 326656   ;;  %v1470_v5 = vld [vmem:[#allocation7] sm:$0xff]  }
  0x29   : > { %1427 = vmatprep.subr.msk.bf16.mxu0 %vm408_vm0, %v1468_v1  ;;  %v410_v3 = vsel %vm408_vm0, %v1468_v1, 0  ;;  %v1471_v4 = vld [vmem:[%s321_s27] sm:$0xff]   ;;  %v1472_v6 = vld [vmem:[%s321_s27 + $0x8] sm:$0xff]   ;;  %v1473_v7 = vld [vmem:[%s321_s27 + $0x10] sm:$0xff]   ;;  %v1557_v23 = vmov 0.0   ;;  %s1558_s24 = smov 2  }
  0x2a   : > { %1366 = vmatpush3.bf16.msra.mxu0 %v410_v3  ;;  %1371 = vmatprep.mubr.msk.bf16.mxu0 %vm395_vm1, %v1471_v4  ;;  %v1474_v8 = vld [vmem:[%s321_s27 + $0x18] sm:$0xff]   ;;  %v1476_v10 = vld [vmem:[%s1809_s3 + $0x30] sm:$0xff]   ;;  %v1477_v11 = vld [vmem:[%s1809_s3 + $0x28] sm:$0xff]  }
  0x2b   : > { %1367 = vmatprep.subr.bf16.mxu0 %v1469_v2  ;;  %v1475_v9 = vld [vmem:[%s1809_s3 + $0x38] sm:$0xff]   ;;  %v1478_v12 = vld [vmem:[%s1809_s3 + $0x20] sm:$0xff]   ;;  %v1480_v14 = vld [vmem:[%s1809_s3 + $0x10] sm:$0xff]  }
  0x2c   : > { %1379 = vmatprep.subr.bf16.mxu1 %v1475_v9  ;;  %v1479_v13 = vld [vmem:[%s1809_s3 + $0x18] sm:$0xff]   ;;  %v1482_v15 = vld [vmem:[%s1809_s3 + $0x8] sm:$0xff]   ;;  %v1483_v16 = vld [vmem:[%s1809_s3] sm:$0xff]  }
  0x2d   : > { %1380 = vmatpush3.bf16.msra.mxu1 %v1475_v9  ;;  %v485_v17 = vld [vmem:[#allocation2] sm:$0xff] }
  0x2e   : > { %1368 = vmatpush3.bf16.msra.mxu0 %v1469_v2  ;;  %1381 = vmatprep.subr.bf16.mxu1 %v1476_v10  ;;  %v487_v19 = vmul.f32 0.9, %v485_v17  ;;  %vm489_vm2 = vcmp.gt.f32.partialorder %v485_v17, 1.0  ;;  %v1680_v20 = vld [vmem:[%s1808_s2] ss:$0 sm:$0xff]  ;;  %v1487_v17 = vld [vmem:[%s1811_s5 + $0x38] sm:$0xff]  }
  0x2f   : > { %1369 = vmatprep.subr.bf16.mxu0 %v1470_v5  ;;  %v490_v24 = vsel %vm489_vm2, 1.0, %v1557_v23 }
  0x31   : > { %1382 = vmatpush3.bf16.msra.mxu1 %v1476_v10 }
  0x32   : > { %1370 = vmatpush3.bf16.msra.mxu0 %v1470_v5  ;;  %1383 = vmatprep.subr.bf16.mxu1 %v1477_v11 }
  0x33   : > { %1403 = vmatprep.subr.bf16.mxu0 %v1487_v17 }
  0x35   : > { %1372 = vmatmul.mubr.msk.bf16.vlgmr.msra.gmra.mxu0 %vm395_vm1, %v1472_v6  ;;  %1384 = vmatpush3.bf16.msra.mxu1 %v1477_v11 }
  0x36   : > { %1375 = vmatprep.mubr.msk.bf16.mxu0 %vm395_vm1, %v1473_v7  ;;  %1385 = vmatprep.subr.bf16.mxu1 %v1478_v12 }
  0x37   : > { %1404 = vmatpush3.bf16.msra.mxu0 %v1487_v17 }
  0x39   : > { %1386 = vmatpush3.bf16.msra.mxu1 %v1478_v12 }
  0x3a   : > { %1387 = vmatprep.subr.bf16.mxu1 %v1479_v13 }
  0x3d   : > { %1376 = vmatmul.mubr.msk.bf16.gmra.mxu0 %vm395_vm1, %v1474_v8  ;;  %1388 = vmatpush3.bf16.msra.mxu1 %v1479_v13 }
  0x3e   : > { %1389 = vmatprep.subr.bf16.mxu1 %v1480_v14 }
  0x41   : > { %1390 = vmatpush3.bf16.msra.mxu1 %v1480_v14 }
  0x42   : > { %1391 = vmatprep.subr.bf16.mxu1 %v1482_v15 }
  0x45   : > { %1392 = vmatpush3.bf16.msra.mxu1 %v1482_v15 }
  0x46   : > { %1393 = vmatprep.subr.bf16.mxu1 %v1483_v16 }
  0x49   : > { %1394 = vmatpush3.bf16.msra.mxu1 %v1483_v16 }
  0xf5   : > { %v1373_v18 = vpop.f32.mrf.mxu0 }
  0xf6   : > { %v455_v35 = vadd.f32 %v1373_v18, %v1680_v20  ;;  %v1488_v18 = vld [vmem:[%s1811_s5 + $0x30] sm:$0xff]  }
  0xf7   : > { %v446_v21 = vpop.f32.mrf.mxu0  ;;  %1405 = vmatprep.subr.bf16.mxu0 %v1488_v18 }
  0xf8   : > { %v447_v22 = vadd.f32 %v1680_v20, %v446_v21  ;;  %1406 = vmatpush3.bf16.msra.mxu0 %v1488_v18  ;;  %v1491_v21 = vld [vmem:[%s1811_s5 + $0x18] sm:$0xff]  }
  0xf9   : > { %v1374_v25 = vpop.f32.mrf.mxu0 }
  0xfa   : > { %v488_v26 = vadd.f32 %v487_v19, %v447_v22  ;;  %v458_v42 = vadd.f32 %v1374_v25, %v1680_v20  ;;  %v1489_v19 = vld [vmem:[%s1811_s5 + $0x28] sm:$0xff]   ;;  %v1492_v22 = vld [vmem:[%s1811_s5 + $0x10] sm:$0xff]   ;;  %v1495_v25 = vld [vmem:[%s1811_s5] sm:$0xff]  }
  0xfb   : > { %v449_v27 = vpop.f32.mrf.mxu0  ;;  %1407 = vmatprep.subr.bf16.mxu0 %v1489_v19 }
  0xfc   : > { %v491_v28 = vsub.f32 %v488_v26, %v490_v24  ;;  %v450_v29 = vadd.f32 %v1680_v20, %v449_v27  ;;  %1408 = vmatpush3.bf16.msra.mxu0 %v1489_v19  ;;  %v1494_v24 = vld [vmem:[%s1811_s5 + $0x8] sm:$0xff]  }
  0xfd   : > { %v1377_v40 = vpop.f32.mrf.mxu0  ;;  %v758_v26 = vld [vmem:[#allocation3] sm:$0xff] }
  0xfe   : > { %vm492_vm3 = vcmp.gt.f32.partialorder %v491_v28, 1.0  ;;  %v499_v30 = vmul.f32 0.9, %v491_v28  ;;  %v471_v1 = vadd.f32 %v1377_v40, %v1680_v20  ;;  %v760_v28 = vmul.f32 0.9, %v758_v26 }
  0xff   : > { %v1267_v31 = vsel %vm492_vm3, 1.0, %v1557_v23  ;;  %v462_v44 = vpop.f32.mrf.mxu0  ;;  %vm762_vm11 = vcmp.gt.f32.partialorder %v758_v26, 1.0  ;;  %v1017_v26 = vld [vmem:[#allocation4] sm:$0xff] }
 0x100   : > { %v495_v32 = vpack.c.bf16 %v1267_v31, %v1267_v31  ;;  %v500_v33 = vadd.f32 %v499_v30, %v450_v29  ;;  %v463_v51 = vadd.f32 %v1680_v20, %v462_v44  ;;  %v1726_v29 = vld [vmem:[%s1810_s4] ss:$0 sm:$0xff] }
 0x101   : > { %v1378_v49 = vpop.f32.mrf.mxu0 }
 0x102   : > { %496 = vst [vmem:[#allocation6] sm:$0xf] %v495_v32  ;;  %v502_v34 = vsub.f32 %v500_v33, %v1267_v31  ;;  %v474_v7 = vadd.f32 %v1378_v49, %v1680_v20  ;;  %v763_v32 = vsel %vm762_vm11, 1.0, %v1557_v23 }
 0x103   : > { %v465_v56 = vpop.f32.mrf.mxu0 }
 0x104   : > { %vm503_vm4 = vcmp.gt.f32.partialorder %v502_v34, 1.0  ;;  %v511_v36 = vmul.f32 0.9, %v502_v34  ;;  %v466_v58 = vadd.f32 %v1680_v20, %v465_v56  ;;  %v1490_v20 = vld [vmem:[%s1811_s5 + $0x20] sm:$0xff]  }
 0x105   : > { %v1268_v37 = vsel %vm503_vm4, 1.0, %v1557_v23  ;;  %1409 = vmatprep.subr.bf16.mxu0 %v1490_v20  ;;  %vm1021_vm4 = vcmp.gt.f32.partialorder %v1017_v26, 1.0 }
 0x106   : > { %v506_v38 = vpack.c.bf16 %v1268_v37, %v1268_v37  ;;  %v512_v39 = vadd.f32 %v511_v36, %v455_v35  ;;  %1410 = vmatpush3.bf16.msra.mxu0 %v1490_v20 }
 0x107   : > { %1411 = vmatprep.subr.bf16.mxu0 %v1491_v21 }
 0x108   : > { %508 = vst [vmem:[#allocation6 + $0x4] sm:$0xf] %v506_v38  ;;  %v514_v41 = vsub.f32 %v512_v39, %v1268_v37 }
 0x10a   : > { %vm515_vm5 = vcmp.gt.f32.partialorder %v514_v41, 1.0  ;;  %v523_v43 = vmul.f32 0.9, %v514_v41  ;;  %1412 = vmatpush3.bf16.msra.mxu0 %v1491_v21 }
 0x10b   : > { %v1269_v45 = vsel %vm515_vm5, 1.0, %v1557_v23  ;;  %1413 = vmatprep.subr.bf16.mxu0 %v1492_v22  ;;  %vm1027_vm5 = vcmask 15360  }
 0x10c   : > { %v518_v46 = vpack.c.bf16 %v1269_v45, %v1269_v45  ;;  %v524_v47 = vadd.f32 %v523_v43, %v458_v42 }
 0x10e   : > { %520 = vst [vmem:[#allocation6 + $0x8] sm:$0xf] %v518_v46  ;;  %v526_v48 = vsub.f32 %v524_v47, %v1269_v45  ;;  %1414 = vmatpush3.bf16.msra.mxu0 %v1492_v22 }
 0x10f   : > { %v1481_v50 = vld [vmem:[#allocation6] sm:$0xff]   ;;  %1415 = vmatprep.subr.bf16.mxu0 %v1494_v24 }
 0x110   : > { %vm527_vm6 = vcmp.gt.f32.partialorder %v526_v48, 1.0  ;;  %v535_v52 = vmul.f32 0.9, %v526_v48  ;;  %1395 = vmatprep.mubr.bf16.mxu1 %v1481_v50 }
 0x111   : > { %v1270_v53 = vsel %vm527_vm6, 1.0, %v1557_v23 }
 0x112   : > { %v530_v54 = vpack.c.bf16 %v1270_v53, %v1270_v53  ;;  %v536_v55 = vadd.f32 %v535_v52, %v463_v51  ;;  %1416 = vmatpush3.bf16.msra.mxu0 %v1494_v24 }
 0x113   : > { %1417 = vmatprep.subr.bf16.mxu0 %v1495_v25 }
 0x114   : > { %532 = vst [vmem:[#allocation6 + $0xc] sm:$0xf] %v530_v54  ;;  %v538_v57 = vsub.f32 %v536_v55, %v1270_v53 }
 0x116   : > { %vm539_vm7 = vcmp.gt.f32.partialorder %v538_v57, 1.0  ;;  %v547_v59 = vmul.f32 0.9, %v538_v57  ;;  %1418 = vmatpush3.bf16.msra.mxu0 %v1495_v25 }
 0x117   : > { %v1271_v60 = vsel %vm539_vm7, 1.0, %v1557_v23 }
 0x118   : > { %v542_v61 = vpack.c.bf16 %v1271_v60, %v1271_v60  ;;  %v548_v62 = vadd.f32 %v547_v59, %v466_v58 }
 0x11a   : > { %544 = vst [vmem:[#allocation6 + $0x10] sm:$0xf] %v542_v61  ;;  %v550_v63 = vsub.f32 %v548_v62, %v1271_v60 }
 0x11b   : > { %v1484_v0 = vld [vmem:[#allocation6 + $0x8] sm:$0xff]  }
 0x11c   : > { %vm551_vm8 = vcmp.gt.f32.partialorder %v550_v63, 1.0  ;;  %v559_v2 = vmul.f32 0.9, %v550_v63  ;;  %1396 = vmatmul.mubr.bf16.vlgmr.msra.gmra.mxu1 %v1484_v0 }
 0x11d   : > { %v1272_v3 = vsel %vm551_vm8, 1.0, %v1557_v23 }
 0x11e   : > { %v554_v4 = vpack.c.bf16 %v1272_v3, %v1272_v3  ;;  %v560_v5 = vadd.f32 %v559_v2, %v471_v1 }
 0x120   : > { %556 = vst [vmem:[#allocation6 + $0x14] sm:$0xf] %v554_v4  ;;  %v562_v6 = vsub.f32 %v560_v5, %v1272_v3 }
 0x122   : > { %vm563_vm9 = vcmp.gt.f32.partialorder %v562_v6, 1.0  ;;  %v571_v8 = vmul.f32 0.9, %v562_v6 }
 0x123   : > { %v1273_v9 = vsel %vm563_vm9, 1.0, %v1557_v23 }
 0x124   : > { %v566_v10 = vpack.c.bf16 %v1273_v9, %v1273_v9  ;;  %v572_v11 = vadd.f32 %v571_v8, %v474_v7 }
 0x126   : > { %568 = vst [vmem:[#allocation6 + $0x18] sm:$0xf] %v566_v10  ;;  %v574_v12 = vsub.f32 %v572_v11, %v1273_v9 }
 0x127   : > { %v1485_v13 = vld [vmem:[#allocation6 + $0x10] sm:$0xff]  }
 0x128   : > { %vm575_vm10 = vcmp.gt.f32.partialorder %v574_v12, 1.0  ;;  %581 = vst [vmem:[#allocation2] sm:$0xff] %v574_v12  ;;  %1399 = vmatprep.mubr.bf16.mxu1 %v1485_v13 }
 0x129   : > { %v1274_v14 = vsel %vm575_vm10, 1.0, %v1557_v23 }
 0x12a   : > { %v578_v15 = vpack.c.bf16 %v1274_v14, %v1274_v14 }
 0x12c   : > { %580 = vst [vmem:[#allocation6 + $0x1c] sm:$0xf] %v578_v15 }
 0x133   : > { %v1486_v16 = vld [vmem:[#allocation6 + $0x18] sm:$0xff]  }
 0x134   : > { %1400 = vmatmul.mubr.bf16.gmra.mxu1 %v1486_v16 }
 0x1dc   : > { %v1397_v27 = vpop.f32.mrf.mxu1 }
 0x1dd   : > { %v728_v43 = vadd.f32 %v1397_v27, %v1726_v29 }
 0x1de   : > { %v719_v30 = vpop.f32.mrf.mxu1 }
 0x1df   : > { %v720_v31 = vadd.f32 %v1726_v29, %v719_v30 }
 0x1e0   : > { %v1398_v33 = vpop.f32.mrf.mxu1 }
 0x1e1   : > { %v761_v34 = vadd.f32 %v760_v28, %v720_v31  ;;  %v731_v49 = vadd.f32 %v1398_v33, %v1726_v29  ;;  %v1019_v28 = vmul.f32 0.9, %v1017_v26 }
 0x1e2   : > { %v722_v35 = vpop.f32.mrf.mxu1 }
 0x1e3   : > { %v764_v36 = vsub.f32 %v761_v34, %v763_v32  ;;  %v723_v37 = vadd.f32 %v1726_v29, %v722_v35  ;;  %v1022_v32 = vsel %vm1021_vm4, 1.0, %v1557_v23 }
 0x1e5   : > { %vm765_vm12 = vcmp.gt.f32.partialorder %v764_v36, 1.0  ;;  %v771_v38 = vmul.f32 0.9, %v764_v36 }
 0x1e6   : > { %v1288_v39 = vsel %vm765_vm12, 1.0, %v1557_v23 }
 0x1e7   : > { %v768_v40 = vpack.c.bf16 %v1288_v39, %v1288_v39  ;;  %v772_v41 = vadd.f32 %v771_v38, %v723_v37 }
 0x1e9   : > { %769 = vst [vmem:[#allocation6] sm:$0xf] %v768_v40  ;;  %v774_v42 = vsub.f32 %v772_v41, %v1288_v39 }
 0x1eb   : > { %vm775_vm13 = vcmp.gt.f32.partialorder %v774_v42, 1.0  ;;  %v781_v44 = vmul.f32 0.9, %v774_v42 }
 0x1ec   : > { %v1289_v45 = vsel %vm775_vm13, 1.0, %v1557_v23 }
 0x1ed   : > { %v778_v46 = vpack.c.bf16 %v1289_v45, %v1289_v45  ;;  %v782_v47 = vadd.f32 %v781_v44, %v728_v43 }
 0x1ef   : > { %779 = vst [vmem:[#allocation6 + $0x4] sm:$0xf] %v778_v46  ;;  %v784_v48 = vsub.f32 %v782_v47, %v1289_v45 }
 0x1f1   : > { %vm785_vm14 = vcmp.gt.f32.partialorder %v784_v48, 1.0  ;;  %v791_v50 = vmul.f32 0.9, %v784_v48 }
 0x1f2   : > { %v1290_v51 = vsel %vm785_vm14, 1.0, %v1557_v23  ;;  %vm1033_vm14 = vcmask 31760  }
 0x1f3   : > { %v788_v52 = vpack.c.bf16 %v1290_v51, %v1290_v51  ;;  %v792_v53 = vadd.f32 %v791_v50, %v731_v49 }
 0x1f4   : > { %v1401_v54 = vpop.f32.mrf.mxu1 }
 0x1f5   : > { %789 = vst [vmem:[#allocation6 + $0x8] sm:$0xf] %v788_v52  ;;  %v794_v55 = vsub.f32 %v792_v53, %v1290_v51  ;;  %v744_v9 = vadd.f32 %v1401_v54, %v1726_v29 }
 0x1f6   : > { %v735_v56 = vpop.f32.mrf.mxu1  ;;  %v1493_v57 = vld [vmem:[#allocation6] sm:$0xff]  }
 0x1f7   : > { %v736_v58 = vadd.f32 %v1726_v29, %v735_v56  ;;  %vm795_vm15 = vcmp.gt.f32.partialorder %v794_v55, 1.0  ;;  %v801_v59 = vmul.f32 0.9, %v794_v55  ;;  %1419 = vmatprep.mubr.bf16.mxu0 %v1493_v57 }
 0x1f8   : > { %v1291_v60 = vsel %vm795_vm15, 1.0, %v1557_v23  ;;  %v1402_v61 = vpop.f32.mrf.mxu1 }
 0x1f9   : > { %v798_v62 = vpack.c.bf16 %v1291_v60, %v1291_v60  ;;  %v802_v63 = vadd.f32 %v801_v59, %v736_v58  ;;  %v747_v15 = vadd.f32 %v1402_v61, %v1726_v29 }
 0x1fa   : > { %v738_v0 = vpop.f32.mrf.mxu1 }
 0x1fb   : > { %799 = vst [vmem:[#allocation6 + $0xc] sm:$0xf] %v798_v62  ;;  %v804_v1 = vsub.f32 %v802_v63, %v1291_v60  ;;  %v739_v2 = vadd.f32 %v1726_v29, %v738_v0  ;;  %v1296_v29 = vld [vmem:[%s1812_s6] ss:$0 sm:$0xff] }
 0x1fd   : > { %vm805_vm0 = vcmp.gt.f32.partialorder %v804_v1, 1.0  ;;  %v811_v3 = vmul.f32 0.9, %v804_v1 }
 0x1fe   : > { %v1292_v4 = vsel %vm805_vm0, 1.0, %v1557_v23 }
 0x1ff   : > { %v808_v5 = vpack.c.bf16 %v1292_v4, %v1292_v4  ;;  %v812_v6 = vadd.f32 %v811_v3, %v739_v2 }
 0x201   : > { %809 = vst [vmem:[#allocation6 + $0x10] sm:$0xf] %v808_v5  ;;  %v814_v7 = vsub.f32 %v812_v6, %v1292_v4 }
 0x202   : > { %v1496_v8 = vld [vmem:[#allocation6 + $0x8] sm:$0xff]  }
 0x203   : > { %vm815_vm1 = vcmp.gt.f32.partialorder %v814_v7, 1.0  ;;  %v821_v10 = vmul.f32 0.9, %v814_v7  ;;  %1420 = vmatmul.mubr.bf16.vlgmr.msra.gmra.mxu0 %v1496_v8 }
 0x204   : > { %v1293_v11 = vsel %vm815_vm1, 1.0, %v1557_v23 }
 0x205   : > { %v818_v12 = vpack.c.bf16 %v1293_v11, %v1293_v11  ;;  %v822_v13 = vadd.f32 %v821_v10, %v744_v9 }
 0x207   : > { %819 = vst [vmem:[#allocation6 + $0x14] sm:$0xf] %v818_v12  ;;  %v824_v14 = vsub.f32 %v822_v13, %v1293_v11 }
 0x209   : > { %vm825_vm2 = vcmp.gt.f32.partialorder %v824_v14, 1.0  ;;  %v831_v16 = vmul.f32 0.9, %v824_v14 }
 0x20a   : > { %v1294_v17 = vsel %vm825_vm2, 1.0, %v1557_v23 }
 0x20b   : > { %v828_v18 = vpack.c.bf16 %v1294_v17, %v1294_v17  ;;  %v832_v19 = vadd.f32 %v831_v16, %v747_v15 }
 0x20d   : > { %829 = vst [vmem:[#allocation6 + $0x18] sm:$0xf] %v828_v18  ;;  %v834_v20 = vsub.f32 %v832_v19, %v1294_v17 }
 0x20e   : > { %v1497_v21 = vld [vmem:[#allocation6 + $0x10] sm:$0xff]  }
 0x20f   : > { %vm835_vm3 = vcmp.gt.f32.partialorder %v834_v20, 1.0  ;;  %840 = vst [vmem:[#allocation3] sm:$0xff] %v834_v20  ;;  %1423 = vmatprep.mubr.bf16.mxu0 %v1497_v21 }
 0x210   : > { %v1295_v22 = vsel %vm835_vm3, 1.0, %v1557_v23 }
 0x211   : > { %v838_v24 = vpack.c.bf16 %v1295_v22, %v1295_v22 }
 0x213   : > { %839 = vst [vmem:[#allocation6 + $0x1c] sm:$0xf] %v838_v24 }
 0x21a   : > { %v1498_v25 = vld [vmem:[#allocation6 + $0x18] sm:$0xff]  }
 0x21b   : > { %1424 = vmatmul.mubr.bf16.gmra.mxu0 %v1498_v25 }
 0x2c3   : > { %v1421_v27 = vpop.f32.mrf.mxu0 }
 0x2c4   : > { %v987_v42 = vadd.f32 %v1421_v27, %v1296_v29 }
 0x2c5   : > { %v978_v30 = vpop.f32.mrf.mxu0 }
 0x2c6   : > { %v979_v31 = vadd.f32 %v1296_v29, %v978_v30 }
 0x2c7   : > { %v1422_v33 = vpop.f32.mrf.mxu0 }
 0x2c8   : > { %v1020_v34 = vadd.f32 %v1019_v28, %v979_v31  ;;  %v990_v47 = vadd.f32 %v1422_v33, %v1296_v29 }
 0x2c9   : > { %v981_v35 = vpop.f32.mrf.mxu0 }
 0x2ca   : > { %v1023_v36 = vsub.f32 %v1020_v34, %v1022_v32  ;;  %v982_v37 = vadd.f32 %v1296_v29, %v981_v35 }
 0x2cc   : > { %v1036_v38 = vmul.f32 0.9, %v1023_v36  ;;  %1030 = vrot.lane.b32.xlu0 %v1023_v36, %s1558_s24  ;;  %vm1024_vm6 = vcmp.gt.f32.partialorder %v1023_v36, 1.0 }
 0x2cd   : > { %v1309_v39 = vsel %vm1024_vm6, 1.0, %v1557_v23 }
 0x2ce   : > { %v1037_v40 = vadd.f32 %v1036_v38, %v982_v37  ;;  %1028 = vst.msk [vmem:[%s1647_s21] sm:$0xff] %vm1027_vm5, %v1309_v39 }
 0x2d0   : > { %v1039_v41 = vsub.f32 %v1037_v40, %v1309_v39 }
 0x2d2   : > { %1046 = vrot.lane.b32.xlu0 %v1039_v41, %s1558_s24  ;;  %vm1040_vm7 = vcmp.gt.f32.partialorder %v1039_v41, 1.0  ;;  %v1051_v43 = vmul.f32 0.9, %v1039_v41 }
 0x2d3   : > { %v1310_v44 = vsel %vm1040_vm7, 1.0, %v1557_v23 }
 0x2d4   : > { %v1052_v45 = vadd.f32 %v1051_v43, %v987_v42  ;;  %1311 = vst.msk [vmem:[%s1647_s21 + $0x8] sm:$0xff] %vm1027_vm5, %v1310_v44 }
 0x2d6   : > { %v1054_v46 = vsub.f32 %v1052_v45, %v1310_v44 }
 0x2d8   : > { %1061 = vrot.lane.b32.xlu1 %v1054_v46, %s1558_s24  ;;  %vm1055_vm8 = vcmp.gt.f32.partialorder %v1054_v46, 1.0  ;;  %v1066_v48 = vmul.f32 0.9, %v1054_v46 }
 0x2d9   : > { %v1313_v49 = vsel %vm1055_vm8, 1.0, %v1557_v23 }
 0x2da   : > { %v1067_v50 = vadd.f32 %v1066_v48, %v990_v47  ;;  %1314 = vst.msk [vmem:[%s1647_s21 + $0x10] sm:$0xff] %vm1027_vm5, %v1313_v49 }
 0x2db   : > { %v1425_v51 = vpop.f32.mrf.mxu0 }
 0x2dc   : > { %v1069_v52 = vsub.f32 %v1067_v50, %v1313_v49  ;;  %v1003_v2 = vadd.f32 %v1425_v51, %v1296_v29 }
 0x2dd   : > { %v994_v53 = vpop.f32.mrf.mxu0 }
 0x2de   : > { %v995_v54 = vadd.f32 %v1296_v29, %v994_v53  ;;  %vm1070_vm9 = vcmp.gt.f32.partialorder %v1069_v52, 1.0  ;;  %v1081_v55 = vmul.f32 0.9, %v1069_v52  ;;  %1076 = vrot.lane.b32.xlu1 %v1069_v52, %s1558_s24 }
 0x2df   : > { %v1316_v56 = vsel %vm1070_vm9, 1.0, %v1557_v23  ;;  %v1426_v57 = vpop.f32.mrf.mxu0 }
 0x2e0   : > { %v1082_v58 = vadd.f32 %v1081_v55, %v995_v54  ;;  %1317 = vst.msk [vmem:[%s1647_s21 + $0x18] sm:$0xff] %vm1027_vm5, %v1316_v56  ;;  %v1006_v7 = vadd.f32 %v1426_v57, %v1296_v29 }
 0x2e1   : > { %v997_v59 = vpop.f32.mrf.mxu0 }
 0x2e2   : > { %v1084_v60 = vsub.f32 %v1082_v58, %v1316_v56  ;;  %v998_v61 = vadd.f32 %v1296_v29, %v997_v59 }
 0x2e4   : > { %v1096_v62 = vmul.f32 0.9, %v1084_v60  ;;  %1091 = vrot.lane.b32.xlu0 %v1084_v60, %s1558_s24  ;;  %vm1085_vm10 = vcmp.gt.f32.partialorder %v1084_v60, 1.0 }
 0x2e5   : > { %v1319_v63 = vsel %vm1085_vm10, 1.0, %v1557_v23 }
 0x2e6   : > { %v1097_v0 = vadd.f32 %v1096_v62, %v998_v61  ;;  %1320 = vst.msk [vmem:[%s1647_s21 + $0x20] sm:$0xff] %vm1027_vm5, %v1319_v63 }
 0x2e8   : > { %v1099_v1 = vsub.f32 %v1097_v0, %v1319_v63 }
 0x2ea   : > { %1106 = vrot.lane.b32.xlu1 %v1099_v1, %s1558_s24  ;;  %vm1100_vm11 = vcmp.gt.f32.partialorder %v1099_v1, 1.0  ;;  %v1111_v3 = vmul.f32 0.9, %v1099_v1 }
 0x2eb   : > { %v1322_v4 = vsel %vm1100_vm11, 1.0, %v1557_v23 }
 0x2ec   : > { %v1112_v5 = vadd.f32 %v1111_v3, %v1003_v2  ;;  %1323 = vst.msk [vmem:[%s1647_s21 + $0x28] sm:$0xff] %vm1027_vm5, %v1322_v4 }
 0x2ee   : > { %v1114_v6 = vsub.f32 %v1112_v5, %v1322_v4 }
 0x2f0   : > { %1121 = vrot.lane.b32.xlu0 %v1114_v6, %s1558_s24  ;;  %vm1115_vm12 = vcmp.gt.f32.partialorder %v1114_v6, 1.0  ;;  %v1126_v8 = vmul.f32 0.9, %v1114_v6 }
 0x2f1   : > { %v1325_v9 = vsel %vm1115_vm12, 1.0, %v1557_v23 }
 0x2f2   : > { %v1127_v10 = vadd.f32 %v1126_v8, %v1006_v7  ;;  %1326 = vst.msk [vmem:[%s1647_s21 + $0x30] sm:$0xff] %vm1027_vm5, %v1325_v9 }
 0x2f4   : > { %v1129_v11 = vsub.f32 %v1127_v10, %v1325_v9 }
 0x2f6   : > { %1136 = vrot.lane.b32.xlu1 %v1129_v11, %s1558_s24  ;;  %1140 = vst [vmem:[#allocation4] sm:$0xff] %v1129_v11  ;;  %vm1130_vm13 = vcmp.gt.f32.partialorder %v1129_v11, 1.0 }
 0x2f7   : > { %v1328_v12 = vsel %vm1130_vm13, 1.0, %v1557_v23 }
 0x2f8   : > { %1329 = vst.msk [vmem:[%s1647_s21 + $0x38] sm:$0xff] %vm1027_vm5, %v1328_v12 }
 0x33e   : > { %v1031_v13 = vpop.permute.xlu0 %1030 }
 0x33f   : > { %1034 = vst.msk [vmem:[%s1647_s21] sm:$0xff] %vm1033_vm14, %v1031_v13 }
 0x344   : > { %v1047_v14 = vpop.permute.xlu0 %1046 }
 0x345   : > { %1312 = vst.msk [vmem:[%s1647_s21 + $0x8] sm:$0xff] %vm1033_vm14, %v1047_v14 }
 0x34a   : > { %v1062_v15 = vpop.permute.xlu1 %1061 }
 0x34b   : > { %1315 = vst.msk [vmem:[%s1647_s21 + $0x10] sm:$0xff] %vm1033_vm14, %v1062_v15 }
 0x350   : > { %v1077_v16 = vpop.permute.xlu1 %1076 }
 0x351   : > { %1318 = vst.msk [vmem:[%s1647_s21 + $0x18] sm:$0xff] %vm1033_vm14, %v1077_v16 }
 0x356   : > { %v1092_v17 = vpop.permute.xlu0 %1091 }
 0x357   : > { %1321 = vst.msk [vmem:[%s1647_s21 + $0x20] sm:$0xff] %vm1033_vm14, %v1092_v17 }
 0x35c   : > { %v1107_v23 = vpop.permute.xlu1 %1106 }
 0x35d   : > { %1324 = vst.msk [vmem:[%s1647_s21 + $0x28] sm:$0xff] %vm1033_vm14, %v1107_v23 }
 0x362   : > { %v1122_v18 = vpop.permute.xlu0 %1121 }
 0x363   : > { %1327 = vst.msk [vmem:[%s1647_s21 + $0x30] sm:$0xff] %vm1033_vm14, %v1122_v18 }
 0x368   : > { %v1137_v19 = vpop.permute.xlu1 %1136 }
 0x369   : > { %1330 = vst.msk [vmem:[%s1647_s21 + $0x38] sm:$0xff] %vm1033_vm14, %v1137_v19 }
 0x36a PF: > { %s18_s26 = sadd.s32 1, %s1551_s26   ;;  %s1816_s24 = smov %s1547_s25 }
 0x36b   : > { %p15_p4 = scmp.ge.s32.totalorder %s18_s26, 5   ;;  %s1817_s25 = smov %s1819_s28 }
 0x36d   :  { %17 = sbr.rel (!%p15_p4) target bundleno = 2 (0x2), region = 108 }
 0x372   :  { %1170 = vsyncpa [#allocation8], 1 }
 0x373   :  { %1172 = vsyncpa [#allocation8 + $0x1], 1 }

</bundles_post_ra>
